<compile_context>
chip_gen: v6e
topology: v6e:2x2x1
jax: 0.10.0
libtpu: 0.0.40
codegen_flags: <defaults>
</compile_context>

<pallas_src>
import math

import jax
import jax.numpy as jnp
from jax.experimental import pallas as pl
from jax.experimental.pallas import tpu as pltpu

BN_EPS = 1e-5
LANE = 128


# ---------------------------------------------------------------------------
# Architecture / parameters (mirrors SysID_MLP.__init__)
# ---------------------------------------------------------------------------
def build_arch(input_size, hidden_size, num_layers, output_size):
    """Static layer description: list of dicts {d_in, d_out, bn, relu}."""
    layers = [dict(d_in=input_size, d_out=hidden_size, bn=True, relu=True)]
    for k in range(2, num_layers):
        d_in = int(hidden_size / 2 ** (k - 2))
        d_out = int(hidden_size / 2 ** (k - 1))
        layers.append(dict(d_in=d_in, d_out=d_out, bn=(k == 2), relu=True))
    d_in = int(hidden_size / 2 ** (num_layers - 2))
    layers.append(dict(d_in=d_in, d_out=output_size, bn=False, relu=False))
    return layers


def init_params(key, layers):
    """PyTorch-equivalent init: Linear W, b ~ U(-1/sqrt(fan_in), 1/sqrt(fan_in)),
    BatchNorm gamma=1, beta=0.  Weights kept in PyTorch (out, in) layout."""
    Ws, bs, gammas, betas = [], [], [], []
    keys = jax.random.split(key, len(layers))
    for lk, layer in zip(keys, layers):
        kw, kb = jax.random.split(lk)
        bound = 1.0 / math.sqrt(layer["d_in"])
        Ws.append(jax.random.uniform(kw, (layer["d_out"], layer["d_in"]),
                                     jnp.float32, -bound, bound))
        bs.append(jax.random.uniform(kb, (layer["d_out"],),
                                     jnp.float32, -bound, bound))
        if layer["bn"]:
            gammas.append(jnp.ones((layer["d_out"],), jnp.float32))
            betas.append(jnp.zeros((layer["d_out"],), jnp.float32))
    return Ws, bs, gammas, betas


def pack_vectors(layers, bs, gammas, betas):
    """Pack every small per-feature vector into one (max_feat, n_cols) f32 array.
    Columns: [b_0 .. b_{L-1}, gamma_0, beta_0, gamma_1, beta_1, ...] (zero-padded)."""
    rows = max(l["d_out"] for l in layers)
    pad = lambda v: jnp.pad(v, (0, rows - v.shape[0]))
    cols = [pad(b) for b in bs]
    for g, be in zip(gammas, betas):
        cols += [pad(g), pad(be)]
    return jnp.stack(cols, axis=1).astype(jnp.float32)


# ---------------------------------------------------------------------------
# VMEM budgeting (per-chip: v5e/v6e 128 MiB, v7x 64 MiB physical)
# ---------------------------------------------------------------------------
def _vmem_budget_bytes():
    cap = 64 * 1024 * 1024            # conservative fallback = v7x physical
    try:
        cap = int(pltpu.get_tpu_info().vmem_capacity_bytes)
    except Exception:
        pass
    # 75% of physical, clamped: ~48 MiB on v7x (headroom under 64 MiB),
    # ~96 MiB on v5e/v6e (raises their 16/32 MiB default scoped limits).
    return int(min(max(cap * 3 // 4, 32 * 1024 * 1024), 112 * 1024 * 1024))


def _vmem_bytes_per_row(layers_p, d_in, o_pad):
    """Rough per-batch-row VMEM cost of one grid step (used to cap tb)."""
    lane_pad = ((d_in + LANE - 1) // LANE) * LANE
    x_bytes = 2 * (lane_pad * 2)                       # bf16 x block, 2 buffers, lane-padded
    act_bytes = 10 * sum(l["d_out"] for l in layers_p)  # f32 intermediates + bf16 copies (~2.5x liveness)
    out_bytes = 2 * (o_pad * 4)                        # f32 out block, 2 buffers
    return x_bytes + act_bytes + out_bytes


# ---------------------------------------------------------------------------
# Fused kernel
# ---------------------------------------------------------------------------
def make_kernel(layers, tb, batch):
    L = len(layers)
    bn_ids = [i for i, l in enumerate(layers) if l["bn"]]
    num_phases = len(bn_ids) + 1

    def kernel(*refs):
        x_ref = refs[0]                 # (tb, d_in) bf16, batch-major block
        w_refs = refs[1:1 + L]          # bf16 (out, in), VMEM-resident
        vec_ref = refs[1 + L]           # packed biases / gamma / beta (f32)
        out_ref = refs[2 + L]           # (o_pad, tb) f32, lane-dense
        scr = refs[3 + L:]              # 2 scratch refs per BN layer
                                        #   phase j      : [sum, sum_sq]
                                        #   after phase j: [scale, shift]

        phase = pl.program_id(0)
        tile = pl.program_id(1)
        nt = pl.num_programs(1)

        # ---- unpack the packed parameter vectors (static slices, f32) ----
        vec = vec_ref[...]                                        # (rows, n_cols)
        biases = [vec[:layers[i]["d_out"], i:i + 1] for i in range(L)]
        gammas = [vec[:layers[li]["d_out"], L + 2 * j:L + 2 * j + 1]
                  for j, li in enumerate(bn_ids)]
        betas = [vec[:layers[li]["d_out"], L + 2 * j + 1:L + 2 * j + 2]
                 for j, li in enumerate(bn_ids)]

        x = x_ref[...]                                            # (tb, d_in) bf16

        # Lane-validity mask (real batch columns vs padding) -> keeps the
        # BatchNorm statistics exact when batch isn't a tile multiple.
        col = tile * tb + jax.lax.broadcasted_iota(jnp.int32, (1, tb), 1)
        valid = col < batch                                       # (1, tb) bool

        # Zero the statistic accumulators once, at the very first grid step.
        @pl.when(jnp.logical_and(phase == 0, tile == 0))
        def _():
            for r in scr:
                r[...] = jnp.zeros_like(r)

        def forward(upto, stop_before_bn):
            """Forward from x through layer `upto` (inclusive).  If
            `stop_before_bn`, return that layer's pre-normalization output."""
            h = None
            for i in range(upto + 1):
                if i == 0:
                    # Fold the batch-major -> feature-major transpose into the
                    # matmul: contract x's last dim, result is (d_out, tb).
                    z = jax.lax.dot_general(
                        w_refs[0][...], x,
                        dimension_numbers=(((1,), (1,)), ((), ())),
                        preferred_element_type=jnp.float32) + biases[0]
                else:
                    z = jnp.dot(w_refs[i][...], h.astype(jnp.bfloat16),
                                preferred_element_type=jnp.float32) + biases[i]
                if stop_before_bn and i == upto:
                    return z
                if layers[i]["bn"]:
                    j = bn_ids.index(i)
                    z = z * scr[2 * j][...] + scr[2 * j + 1][...]  # scale/shift
                if layers[i]["relu"]:
                    z = jnp.maximum(z, 0.0)
                h = z
            return h

        # ---- statistics phases: one per BatchNorm layer ----
        for j, li in enumerate(bn_ids):
            @pl.when(phase == j)
            def _(j=j, li=li):
                z = jnp.where(valid, forward(li, True), 0.0)      # (F, tb)
                scr[2 * j][...] += jnp.sum(z, axis=1, keepdims=True)
                scr[2 * j + 1][...] += jnp.sum(z * z, axis=1, keepdims=True)

                # Last tile of this phase: (sum, sum_sq) -> (scale, shift).
                @pl.when(tile == nt - 1)
                def _():
                    inv_n = 1.0 / float(batch)
                    mean = scr[2 * j][...] * inv_n
                    var = scr[2 * j + 1][...] * inv_n - mean * mean
                    scale = gammas[j] * jax.lax.rsqrt(var + BN_EPS)
                    shift = betas[j] - mean * scale
                    scr[2 * j][...] = scale
                    scr[2 * j + 1][...] = shift

        # ---- final phase: full forward, lane-dense (o_pad, tb) store.
        # (No writes at all in the statistics phases; their out block index is
        #  constant, so no placeholder data is ever written back to HBM.)
        @pl.when(phase == num_phases - 1)
        def _():
            out_ref[...] = forward(L - 1, False).astype(out_ref.dtype)

    return kernel, num_phases, bn_ids


# ---------------------------------------------------------------------------
# Wrapper
# ---------------------------------------------------------------------------
def sysid_mlp_forward(x, Ws, bs, gammas, betas, layers, *, tb=None):
    """x: (B, input_size) f32 -> (B, output_size) f32 (SysID_MLP.forward).

    tb=None picks the largest VMEM-budget-fitting batch tile (whole-batch
    resident when possible); an explicit tb is honored (rounded to 128, capped
    to the VMEM budget) -- mainly useful for exercising the multi-tile path.
    """
    B, d_in = x.shape
    assert d_in == layers[0]["d_in"] and len(Ws) == len(layers)
    d_out = layers[-1]["d_out"]

    # Pad the output features to a full 8-sublane group -> unmasked vst on the
    # lane-dense output slab; sliced back to d_out below.
    o_pad = max(8, ((d_out + 7) // 8) * 8)
    layers_p = [dict(l) for l in layers]
    layers_p[-1]["d_out"] = o_pad
    Ws_p = list(Ws)
    if o_pad != d_out:
        Ws_p[-1] = jnp.pad(Ws[-1], ((0, o_pad - d_out), (0, 0)))

    packed_vec = pack_vectors(layers_p, bs, gammas, betas)
    ws_bf16 = [w.astype(jnp.bfloat16) for w in Ws_p]   # MXU inputs; f32 masters stay outside

    # ---- batch-tile selection (per-chip VMEM budget aware) ----
    budget = _vmem_budget_bytes()
    per_row = _vmem_bytes_per_row(layers_p, d_in, o_pad)
    fit = max(LANE, (budget - 4 * 1024 * 1024) // per_row)
    tb_fit = max(LANE, (fit // LANE) * LANE)
    b_ceil = ((B + LANE - 1) // LANE) * LANE
    if tb is None:
        # Prefer whole-batch residency: x is then DMA'd once and reused by all
        # phases (1x HBM read instead of num_phases x).
        tb = min(b_ceil, tb_fit)
    else:
        tb = min(max(LANE, ((tb + LANE - 1) // LANE) * LANE), tb_fit, b_ceil)
    nt = (B + tb - 1) // tb
    b_pad = nt * tb

    # bf16 x stream (halves the dominant HBM read and the x double-buffer);
    # batch-major, NO host transpose -- the layout fix lives in the kernel's
    # layer-0 dot_general.  Pad only when the batch isn't tile-aligned.
    x_bf = x.astype(jnp.bfloat16)
    if b_pad != B:
        x_bf = jnp.pad(x_bf, ((0, b_pad - B), (0, 0)))

    kernel, num_phases, bn_ids = make_kernel(layers_p, tb, B)

    in_specs = [pl.BlockSpec((tb, d_in), lambda p, t: (t, 0))]     # x tiles
    # (Optional: pipeline_mode=pl.Buffered(3) on the x spec if its DMA is still
    #  exposed after enlarging tb; default double-buffering suffices here.)
    for w in ws_bf16:                                              # resident weights
        in_specs.append(pl.BlockSpec(w.shape, lambda p, t: (0, 0)))
    in_specs.append(pl.BlockSpec(packed_vec.shape, lambda p, t: (0, 0)))

    scratch_shapes = []
    for li in bn_ids:
        f = layers_p[li]["d_out"]
        scratch_shapes += [pltpu.VMEM((f, 1), jnp.float32),
                           pltpu.VMEM((f, 1), jnp.float32)]

    last = num_phases - 1
    # Statistics phases map to a constant output block (never written by the
    # kernel, never flushed); only the final phase walks the batch tiles.
    out_spec = pl.BlockSpec((o_pad, tb),
                            lambda p, t: (0, jnp.where(p == last, t, 0)))

    y_pad = pl.pallas_call(
        kernel,
        out_shape=jax.ShapeDtypeStruct((o_pad, b_pad), jnp.float32),
        grid=(num_phases, nt),
        in_specs=in_specs,
        out_specs=out_spec,
        scratch_shapes=scratch_shapes,
        # Both axes "arbitrary": the tile axis carries BN statistics in VMEM
        # scratch, so it must run sequentially.
        # TODO(synk): v7x 2-TC split of the tile axis with a CMEM reduction.
        compiler_params=pltpu.CompilerParams(
            dimension_semantics=("arbitrary", "arbitrary"),
            vmem_limit_bytes=int(budget)),
    )(x_bf, *ws_bf16, packed_vec)

    return y_pad[:d_out, :B].T


# ---------------------------------------------------------------------------
# Pure-JAX references
# ---------------------------------------------------------------------------
def reference_forward(x, Ws, bs, gammas, betas, layers, *, bf16_matmul=False):
    """SysID_MLP.forward in plain JAX (train-mode BatchNorm, biased variance).
    With bf16_matmul=True the matmul inputs are quantized to bf16 exactly like
    the kernel's MXU path (f32 accumulation, f32 BN/ReLU math)."""
    h = x.astype(jnp.float32)
    j = 0
    for i, layer in enumerate(layers):
        w, b = Ws[i], bs[i]
        if bf16_matmul:
            z = jnp.dot(h.astype(jnp.bfloat16), w.astype(jnp.bfloat16).T,
                        preferred_element_type=jnp.float32) + b
        else:
            z = jnp.dot(h, w.T, precision=jax.lax.Precision.HIGHEST) + b
        if layer["bn"]:
            mean = jnp.mean(z, axis=0, keepdims=True)
            var = jnp.mean(z * z, axis=0, keepdims=True) - mean * mean
            z = (z - mean) * jax.lax.rsqrt(var + BN_EPS) * gammas[j] + betas[j]
            j += 1
        if layer["relu"]:
            z = jnp.maximum(z, 0.0)
        h = z
    return h


# ---------------------------------------------------------------------------
# Demo / self-test
# ---------------------------------------------------------------------------
if __name__ == "__main__":
    input_size, hidden_size, num_layers, output_size = 16, 32, 4, 4
    batch = 300   # not a multiple of 128 -> exercises the padding mask

    key = jax.random.PRNGKey(0)
    kx, kp = jax.random.split(key)
    x = jax.random.normal(kx, (batch, input_size), jnp.float32)

    layers = build_arch(input_size, hidden_size, num_layers, output_size)
    Ws, bs, gammas, betas = init_params(kp, layers)

    # (a) auto tile: whole-batch-resident path (nt == 1, x DMA'd once).
    out_auto = sysid_mlp_forward(x, Ws, bs, gammas, betas, layers)
    # (b) forced small tile: multi-tile path (cross-tile BN statistics + mask).
    out_tiled = sysid_mlp_forward(x, Ws, bs, gammas, betas, layers, tb=128)
    jax.block_until_ready((out_auto, out_tiled))

    ref_bf16 = reference_forward(x, Ws, bs, gammas, betas, layers,
                                 bf16_matmul=True)
    ref_f32 = reference_forward(x, Ws, bs, gammas, betas, layers,
                                bf16_matmul=False)

    for out in (out_auto, out_tiled):
        assert out.shape == (batch, output_size)
        assert bool(jnp.all(jnp.isfinite(out)))
        # (1) Tight-ish check vs a reference with the SAME bf16 MXU-input
        #     quantization: validates tiling / masking / cross-tile BN stats.
        err_bf16 = float(jnp.max(jnp.abs(out - ref_bf16)))
        assert jnp.allclose(out, ref_bf16, atol=1e-2, rtol=1e-2), err_bf16
        # (2) Fidelity vs pure-f32 PyTorch-equivalent math (bf16 error budget).
        err_f32 = float(jnp.max(jnp.abs(out - ref_f32)))
        assert jnp.allclose(out, ref_f32, atol=1e-1, rtol=1e-1), err_f32

    print("KERNEL_OK")
</pallas_src>

<mosaic_0001>
module attributes {stable_mosaic.version = 11 : i64} {
  func.func @kernel(%arg0: i32, %arg1: i32, %arg2: memref<384x16xbf16, #tpu.memory_space<vmem>>, %arg3: memref<32x16xbf16, #tpu.memory_space<vmem>>, %arg4: memref<16x32xbf16, #tpu.memory_space<vmem>>, %arg5: memref<8x16xbf16, #tpu.memory_space<vmem>>, %arg6: memref<8x8xbf16, #tpu.memory_space<vmem>>, %arg7: memref<32x8xf32, #tpu.memory_space<vmem>>, %arg8: memref<8x384xf32, #tpu.memory_space<vmem>>, %arg9: memref<32x1xf32, #tpu.memory_space<vmem>>, %arg10: memref<32x1xf32, #tpu.memory_space<vmem>>, %arg11: memref<16x1xf32, #tpu.memory_space<vmem>>, %arg12: memref<16x1xf32, #tpu.memory_space<vmem>>) attributes {dimension_semantics = [#tpu.dimension_semantics<arbitrary>, #tpu.dimension_semantics<arbitrary>], iteration_bounds = array<i64: 3, 1>, scalar_prefetch = 0 : i64, scratch_operands = 4 : i64, tpu.core_type = #tpu.core_type<tc>, window_params = [{transform_indices = @transform_0, window_bounds = array<i64: 384, 16>}, {pipeline_mode = #tpu.pipeline_mode<synchronous>, transform_indices = @transform_1, window_bounds = array<i64: 32, 16>}, {pipeline_mode = #tpu.pipeline_mode<synchronous>, transform_indices = @transform_2, window_bounds = array<i64: 16, 32>}, {pipeline_mode = #tpu.pipeline_mode<synchronous>, transform_indices = @transform_3, window_bounds = array<i64: 8, 16>}, {pipeline_mode = #tpu.pipeline_mode<synchronous>, transform_indices = @transform_4, window_bounds = array<i64: 8, 8>}, {pipeline_mode = #tpu.pipeline_mode<synchronous>, transform_indices = @transform_5, window_bounds = array<i64: 32, 8>}, {transform_indices = @transform_6, window_bounds = array<i64: 8, 384>}]} {
    %c0 = arith.constant 0 : index
    %c0_0 = arith.constant 0 : index
    %0 = vector.load %arg7[%c0, %c0_0] : memref<32x8xf32, #tpu.memory_space<vmem>>, vector<32x8xf32>
    %1 = vector.extract_strided_slice %0 {offsets = [0, 0], sizes = [32, 1], strides = [1, 1]} : vector<32x8xf32> to vector<32x1xf32>
    %2 = vector.extract_strided_slice %0 {offsets = [0, 1], sizes = [16, 1], strides = [1, 1]} : vector<32x8xf32> to vector<16x1xf32>
    %3 = vector.extract_strided_slice %0 {offsets = [0, 2], sizes = [8, 1], strides = [1, 1]} : vector<32x8xf32> to vector<8x1xf32>
    %4 = vector.extract_strided_slice %0 {offsets = [0, 3], sizes = [8, 1], strides = [1, 1]} : vector<32x8xf32> to vector<8x1xf32>
    %5 = vector.extract_strided_slice %0 {offsets = [0, 4], sizes = [32, 1], strides = [1, 1]} : vector<32x8xf32> to vector<32x1xf32>
    %6 = vector.extract_strided_slice %0 {offsets = [0, 6], sizes = [16, 1], strides = [1, 1]} : vector<32x8xf32> to vector<16x1xf32>
    %7 = vector.extract_strided_slice %0 {offsets = [0, 5], sizes = [32, 1], strides = [1, 1]} : vector<32x8xf32> to vector<32x1xf32>
    %8 = vector.extract_strided_slice %0 {offsets = [0, 7], sizes = [16, 1], strides = [1, 1]} : vector<32x8xf32> to vector<16x1xf32>
    %c0_1 = arith.constant 0 : index
    %c0_2 = arith.constant 0 : index
    %9 = vector.load %arg2[%c0_1, %c0_2] : memref<384x16xbf16, #tpu.memory_space<vmem>>, vector<384x16xbf16>
    %c384_i32 = arith.constant 384 : i32
    %10 = arith.muli %arg1, %c384_i32 : i32
    %11 = tpu.iota {dimensions = array<i32: 1>} : vector<1x384xi32>
    %12 = vector.broadcast %10 : i32 to vector<1x384xi32>
    %13 = arith.addi %12, %11 : vector<1x384xi32>
    %c300_i32 = arith.constant 300 : i32
    %14 = vector.broadcast %c300_i32 : i32 to vector<1x384xi32>
    %15 = arith.cmpi slt, %13, %14 : vector<1x384xi32>
    %c0_i32 = arith.constant 0 : i32
    %16 = arith.cmpi eq, %arg0, %c0_i32 : i32
    %c0_i32_3 = arith.constant 0 : i32
    %17 = arith.cmpi eq, %arg1, %c0_i32_3 : i32
    %18 = arith.andi %16, %17 : i1
    %19 = arith.extui %18 : i1 to i32
    %c0_i32_4 = arith.constant 0 : i32
    %20 = arith.cmpi ne, %19, %c0_i32_4 : i32
    scf.if %20 {
      %cst = arith.constant 0.000000e+00 : f32
      %30 = vector.broadcast %cst : f32 to vector<32x1xf32>
      %c0_9 = arith.constant 0 : index
      %c0_10 = arith.constant 0 : index
      %31 = vector.load %arg9[%c0_9, %c0_10] : memref<32x1xf32, #tpu.memory_space<vmem>>, vector<32x1xf32>
      tpu.vector_store %arg9[%c0_9, %c0_10], %30 {strides = array<i32>} : memref<32x1xf32, #tpu.memory_space<vmem>>, vector<32x1xf32>,
      %cst_11 = arith.constant 0.000000e+00 : f32
      %32 = vector.broadcast %cst_11 : f32 to vector<32x1xf32>
      %c0_12 = arith.constant 0 : index
      %c0_13 = arith.constant 0 : index
      %33 = vector.load %arg10[%c0_12, %c0_13] : memref<32x1xf32, #tpu.memory_space<vmem>>, vector<32x1xf32>
      tpu.vector_store %arg10[%c0_12, %c0_13], %32 {strides = array<i32>} : memref<32x1xf32, #tpu.memory_space<vmem>>, vector<32x1xf32>,
      %cst_14 = arith.constant 0.000000e+00 : f32
      %34 = vector.broadcast %cst_14 : f32 to vector<16x1xf32>
      %c0_15 = arith.constant 0 : index
      %c0_16 = arith.constant 0 : index
      %35 = vector.load %arg11[%c0_15, %c0_16] : memref<16x1xf32, #tpu.memory_space<vmem>>, vector<16x1xf32>
      tpu.vector_store %arg11[%c0_15, %c0_16], %34 {strides = array<i32>} : memref<16x1xf32, #tpu.memory_space<vmem>>, vector<16x1xf32>,
      %cst_17 = arith.constant 0.000000e+00 : f32
      %36 = vector.broadcast %cst_17 : f32 to vector<16x1xf32>
      %c0_18 = arith.constant 0 : index
      %c0_19 = arith.constant 0 : index
      %37 = vector.load %arg12[%c0_18, %c0_19] : memref<16x1xf32, #tpu.memory_space<vmem>>, vector<16x1xf32>
      tpu.vector_store %arg12[%c0_18, %c0_19], %36 {strides = array<i32>} : memref<16x1xf32, #tpu.memory_space<vmem>>, vector<16x1xf32>,
    } else {
    }
    %c0_i32_5 = arith.constant 0 : i32
    %21 = arith.cmpi eq, %arg0, %c0_i32_5 : i32
    %22 = arith.extui %21 : i1 to i32
    %c0_i32_6 = arith.constant 0 : i32
    %23 = arith.cmpi ne, %22, %c0_i32_6 : i32
    scf.if %23 {
      %c0_9 = arith.constant 0 : index
      %c0_10 = arith.constant 0 : index
      %30 = vector.load %arg3[%c0_9, %c0_10] : memref<32x16xbf16, #tpu.memory_space<vmem>>, vector<32x16xbf16>
      %cst = arith.constant dense<0.000000e+00> : vector<32x384xf32>
      %31 = tpu.matmul %30, %9, %cst {dimension_numbers = #tpu.dot_dimension_numbers<[1], [1], [0], [0], [0, 0, 1, 0], [], []>} : vector<32x16xbf16>, vector<384x16xbf16>, vector<32x384xf32> -> vector<32x384xf32>
      %32 = vector.broadcast %1 : vector<32x1xf32> to vector<32x384xf32>
      %33 = arith.addf %31, %32 : vector<32x384xf32>
      %cst_11 = arith.constant 0.000000e+00 : f32
      %34 = vector.shape_cast %15 : vector<1x384xi1> to vector<1x384xi1>
      %35 = vector.broadcast %34 : vector<1x384xi1> to vector<32x384xi1>
      %36 = vector.broadcast %cst_11 : f32 to vector<32x384xf32>
      %37 = arith.select %35, %33, %36 : vector<32x384xi1>, vector<32x384xf32>
      %c0_12 = arith.constant 0 : index
      %c0_13 = arith.constant 0 : index
      %38 = vector.load %arg9[%c0_12, %c0_13] : memref<32x1xf32, #tpu.memory_space<vmem>>, vector<32x1xf32>
      %cst_14 = arith.constant dense<0.000000e+00> : vector<32xf32>
      %39 = vector.multi_reduction <add>, %37, %cst_14 [1] : vector<32x384xf32> to vector<32xf32>
      %40 = vector.shape_cast %39 : vector<32xf32> to vector<32x1xf32>
      %41 = arith.addf %38, %40 : vector<32x1xf32>
      %c0_15 = arith.constant 0 : index
      %c0_16 = arith.constant 0 : index
      %42 = vector.load %arg9[%c0_15, %c0_16] : memref<32x1xf32, #tpu.memory_space<vmem>>, vector<32x1xf32>
      tpu.vector_store %arg9[%c0_15, %c0_16], %41 {strides = array<i32>} : memref<32x1xf32, #tpu.memory_space<vmem>>, vector<32x1xf32>,
      %c0_17 = arith.constant 0 : index
      %c0_18 = arith.constant 0 : index
      %43 = vector.load %arg10[%c0_17, %c0_18] : memref<32x1xf32, #tpu.memory_space<vmem>>, vector<32x1xf32>
      %44 = arith.mulf %37, %37 : vector<32x384xf32>
      %cst_19 = arith.constant dense<0.000000e+00> : vector<32xf32>
      %45 = vector.multi_reduction <add>, %44, %cst_19 [1] : vector<32x384xf32> to vector<32xf32>
      %46 = vector.shape_cast %45 : vector<32xf32> to vector<32x1xf32>
      %47 = arith.addf %43, %46 : vector<32x1xf32>
      %c0_20 = arith.constant 0 : index
      %c0_21 = arith.constant 0 : index
      %48 = vector.load %arg10[%c0_20, %c0_21] : memref<32x1xf32, #tpu.memory_space<vmem>>, vector<32x1xf32>
      tpu.vector_store %arg10[%c0_20, %c0_21], %47 {strides = array<i32>} : memref<32x1xf32, #tpu.memory_space<vmem>>, vector<32x1xf32>,
      %c0_i32_22 = arith.constant 0 : i32
      %49 = arith.cmpi eq, %arg1, %c0_i32_22 : i32
      %50 = arith.extui %49 : i1 to i32
      %c0_i32_23 = arith.constant 0 : i32
      %51 = arith.cmpi ne, %50, %c0_i32_23 : i32
      scf.if %51 {
        %c0_24 = arith.constant 0 : index
        %c0_25 = arith.constant 0 : index
        %52 = vector.load %arg9[%c0_24, %c0_25] : memref<32x1xf32, #tpu.memory_space<vmem>>, vector<32x1xf32>
        %cst_26 = arith.constant 0.00333333341 : f32
        %53 = vector.broadcast %cst_26 : f32 to vector<32x1xf32>
        %54 = arith.mulf %52, %53 : vector<32x1xf32>
        %c0_27 = arith.constant 0 : index
        %c0_28 = arith.constant 0 : index
        %55 = vector.load %arg10[%c0_27, %c0_28] : memref<32x1xf32, #tpu.memory_space<vmem>>, vector<32x1xf32>
        %cst_29 = arith.constant 0.00333333341 : f32
        %56 = vector.broadcast %cst_29 : f32 to vector<32x1xf32>
        %57 = arith.mulf %55, %56 : vector<32x1xf32>
        %58 = arith.mulf %54, %54 : vector<32x1xf32>
        %59 = arith.subf %57, %58 : vector<32x1xf32>
        %cst_30 = arith.constant 9.99999974E-6 : f32
        %60 = vector.broadcast %cst_30 : f32 to vector<32x1xf32>
        %61 = arith.addf %59, %60 : vector<32x1xf32>
        %62 = math.rsqrt %61 : vector<32x1xf32>
        %63 = arith.mulf %5, %62 : vector<32x1xf32>
        %64 = arith.mulf %54, %63 : vector<32x1xf32>
        %65 = arith.subf %7, %64 : vector<32x1xf32>
        %c0_31 = arith.constant 0 : index
        %c0_32 = arith.constant 0 : index
        %66 = vector.load %arg9[%c0_31, %c0_32] : memref<32x1xf32, #tpu.memory_space<vmem>>, vector<32x1xf32>
        tpu.vector_store %arg9[%c0_31, %c0_32], %63 {strides = array<i32>} : memref<32x1xf32, #tpu.memory_space<vmem>>, vector<32x1xf32>,
        %c0_33 = arith.constant 0 : index
        %c0_34 = arith.constant 0 : index
        %67 = vector.load %arg10[%c0_33, %c0_34] : memref<32x1xf32, #tpu.memory_space<vmem>>, vector<32x1xf32>
        tpu.vector_store %arg10[%c0_33, %c0_34], %65 {strides = array<i32>} : memref<32x1xf32, #tpu.memory_space<vmem>>, vector<32x1xf32>,
      } else {
      }
    } else {
    }
    %c1_i32 = arith.constant 1 : i32
    %24 = arith.cmpi eq, %arg0, %c1_i32 : i32
    %25 = arith.extui %24 : i1 to i32
    %c0_i32_7 = arith.constant 0 : i32
    %26 = arith.cmpi ne, %25, %c0_i32_7 : i32
    scf.if %26 {
      %c0_9 = arith.constant 0 : index
      %c0_10 = arith.constant 0 : index
      %30 = vector.load %arg3[%c0_9, %c0_10] : memref<32x16xbf16, #tpu.memory_space<vmem>>, vector<32x16xbf16>
      %cst = arith.constant dense<0.000000e+00> : vector<32x384xf32>
      %31 = tpu.matmul %30, %9, %cst {dimension_numbers = #tpu.dot_dimension_numbers<[1], [1], [0], [0], [0, 0, 1, 0], [], []>} : vector<32x16xbf16>, vector<384x16xbf16>, vector<32x384xf32> -> vector<32x384xf32>
      %32 = vector.broadcast %1 : vector<32x1xf32> to vector<32x384xf32>
      %33 = arith.addf %31, %32 : vector<32x384xf32>
      %c0_11 = arith.constant 0 : index
      %c0_12 = arith.constant 0 : index
      %34 = vector.load %arg9[%c0_11, %c0_12] : memref<32x1xf32, #tpu.memory_space<vmem>>, vector<32x1xf32>
      %35 = vector.broadcast %34 : vector<32x1xf32> to vector<32x384xf32>
      %36 = arith.mulf %33, %35 : vector<32x384xf32>
      %c0_13 = arith.constant 0 : index
      %c0_14 = arith.constant 0 : index
      %37 = vector.load %arg10[%c0_13, %c0_14] : memref<32x1xf32, #tpu.memory_space<vmem>>, vector<32x1xf32>
      %38 = vector.broadcast %37 : vector<32x1xf32> to vector<32x384xf32>
      %39 = arith.addf %36, %38 : vector<32x384xf32>
      %cst_15 = arith.constant 0.000000e+00 : f32
      %40 = vector.broadcast %cst_15 : f32 to vector<32x384xf32>
      %41 = arith.maximumf %39, %40 : vector<32x384xf32>
      %c0_16 = arith.constant 0 : index
      %c0_17 = arith.constant 0 : index
      %42 = vector.load %arg4[%c0_16, %c0_17] : memref<16x32xbf16, #tpu.memory_space<vmem>>, vector<16x32xbf16>
      %43 = arith.truncf %41 : vector<32x384xf32> to vector<32x384xbf16>
      %cst_18 = arith.constant dense<0.000000e+00> : vector<16x384xf32>
      %44 = tpu.matmul %42, %43, %cst_18 {dimension_numbers = #tpu.dot_dimension_numbers<[1], [0], [0], [1], [0, 0, 1, 1], [], []>} : vector<16x32xbf16>, vector<32x384xbf16>, vector<16x384xf32> -> vector<16x384xf32>
      %45 = vector.broadcast %2 : vector<16x1xf32> to vector<16x384xf32>
      %46 = arith.addf %44, %45 : vector<16x384xf32>
      %cst_19 = arith.constant 0.000000e+00 : f32
      %47 = vector.shape_cast %15 : vector<1x384xi1> to vector<1x384xi1>
      %48 = vector.broadcast %47 : vector<1x384xi1> to vector<16x384xi1>
      %49 = vector.broadcast %cst_19 : f32 to vector<16x384xf32>
      %50 = arith.select %48, %46, %49 : vector<16x384xi1>, vector<16x384xf32>
      %c0_20 = arith.constant 0 : index
      %c0_21 = arith.constant 0 : index
      %51 = vector.load %arg11[%c0_20, %c0_21] : memref<16x1xf32, #tpu.memory_space<vmem>>, vector<16x1xf32>
      %cst_22 = arith.constant dense<0.000000e+00> : vector<16xf32>
      %52 = vector.multi_reduction <add>, %50, %cst_22 [1] : vector<16x384xf32> to vector<16xf32>
      %53 = vector.shape_cast %52 : vector<16xf32> to vector<16x1xf32>
      %54 = arith.addf %51, %53 : vector<16x1xf32>
      %c0_23 = arith.constant 0 : index
      %c0_24 = arith.constant 0 : index
      %55 = vector.load %arg11[%c0_23, %c0_24] : memref<16x1xf32, #tpu.memory_space<vmem>>, vector<16x1xf32>
      tpu.vector_store %arg11[%c0_23, %c0_24], %54 {strides = array<i32>} : memref<16x1xf32, #tpu.memory_space<vmem>>, vector<16x1xf32>,
      %c0_25 = arith.constant 0 : index
      %c0_26 = arith.constant 0 : index
      %56 = vector.load %arg12[%c0_25, %c0_26] : memref<16x1xf32, #tpu.memory_space<vmem>>, vector<16x1xf32>
      %57 = arith.mulf %50, %50 : vector<16x384xf32>
      %cst_27 = arith.constant dense<0.000000e+00> : vector<16xf32>
      %58 = vector.multi_reduction <add>, %57, %cst_27 [1] : vector<16x384xf32> to vector<16xf32>
      %59 = vector.shape_cast %58 : vector<16xf32> to vector<16x1xf32>
      %60 = arith.addf %56, %59 : vector<16x1xf32>
      %c0_28 = arith.constant 0 : index
      %c0_29 = arith.constant 0 : index
      %61 = vector.load %arg12[%c0_28, %c0_29] : memref<16x1xf32, #tpu.memory_space<vmem>>, vector<16x1xf32>
      tpu.vector_store %arg12[%c0_28, %c0_29], %60 {strides = array<i32>} : memref<16x1xf32, #tpu.memory_space<vmem>>, vector<16x1xf32>,
      %c0_i32_30 = arith.constant 0 : i32
      %62 = arith.cmpi eq, %arg1, %c0_i32_30 : i32
      %63 = arith.extui %62 : i1 to i32
      %c0_i32_31 = arith.constant 0 : i32
      %64 = arith.cmpi ne, %63, %c0_i32_31 : i32
      scf.if %64 {
        %c0_32 = arith.constant 0 : index
        %c0_33 = arith.constant 0 : index
        %65 = vector.load %arg11[%c0_32, %c0_33] : memref<16x1xf32, #tpu.memory_space<vmem>>, vector<16x1xf32>
        %cst_34 = arith.constant 0.00333333341 : f32
        %66 = vector.broadcast %cst_34 : f32 to vector<16x1xf32>
        %67 = arith.mulf %65, %66 : vector<16x1xf32>
        %c0_35 = arith.constant 0 : index
        %c0_36 = arith.constant 0 : index
        %68 = vector.load %arg12[%c0_35, %c0_36] : memref<16x1xf32, #tpu.memory_space<vmem>>, vector<16x1xf32>
        %cst_37 = arith.constant 0.00333333341 : f32
        %69 = vector.broadcast %cst_37 : f32 to vector<16x1xf32>
        %70 = arith.mulf %68, %69 : vector<16x1xf32>
        %71 = arith.mulf %67, %67 : vector<16x1xf32>
        %72 = arith.subf %70, %71 : vector<16x1xf32>
        %cst_38 = arith.constant 9.99999974E-6 : f32
        %73 = vector.broadcast %cst_38 : f32 to vector<16x1xf32>
        %74 = arith.addf %72, %73 : vector<16x1xf32>
        %75 = math.rsqrt %74 : vector<16x1xf32>
        %76 = arith.mulf %6, %75 : vector<16x1xf32>
        %77 = arith.mulf %67, %76 : vector<16x1xf32>
        %78 = arith.subf %8, %77 : vector<16x1xf32>
        %c0_39 = arith.constant 0 : index
        %c0_40 = arith.constant 0 : index
        %79 = vector.load %arg11[%c0_39, %c0_40] : memref<16x1xf32, #tpu.memory_space<vmem>>, vector<16x1xf32>
        tpu.vector_store %arg11[%c0_39, %c0_40], %76 {strides = array<i32>} : memref<16x1xf32, #tpu.memory_space<vmem>>, vector<16x1xf32>,
        %c0_41 = arith.constant 0 : index
        %c0_42 = arith.constant 0 : index
        %80 = vector.load %arg12[%c0_41, %c0_42] : memref<16x1xf32, #tpu.memory_space<vmem>>, vector<16x1xf32>
        tpu.vector_store %arg12[%c0_41, %c0_42], %78 {strides = array<i32>} : memref<16x1xf32, #tpu.memory_space<vmem>>, vector<16x1xf32>,
      } else {
      }
    } else {
    }
    %c2_i32 = arith.constant 2 : i32
    %27 = arith.cmpi eq, %arg0, %c2_i32 : i32
    %28 = arith.extui %27 : i1 to i32
    %c0_i32_8 = arith.constant 0 : i32
    %29 = arith.cmpi ne, %28, %c0_i32_8 : i32
    scf.if %29 {
      %c0_9 = arith.constant 0 : index
      %c0_10 = arith.constant 0 : index
      %30 = vector.load %arg3[%c0_9, %c0_10] : memref<32x16xbf16, #tpu.memory_space<vmem>>, vector<32x16xbf16>
      %cst = arith.constant dense<0.000000e+00> : vector<32x384xf32>
      %31 = tpu.matmul %30, %9, %cst {dimension_numbers = #tpu.dot_dimension_numbers<[1], [1], [0], [0], [0, 0, 1, 0], [], []>} : vector<32x16xbf16>, vector<384x16xbf16>, vector<32x384xf32> -> vector<32x384xf32>
      %32 = vector.broadcast %1 : vector<32x1xf32> to vector<32x384xf32>
      %33 = arith.addf %31, %32 : vector<32x384xf32>
      %c0_11 = arith.constant 0 : index
      %c0_12 = arith.constant 0 : index
      %34 = vector.load %arg9[%c0_11, %c0_12] : memref<32x1xf32, #tpu.memory_space<vmem>>, vector<32x1xf32>
      %35 = vector.broadcast %34 : vector<32x1xf32> to vector<32x384xf32>
      %36 = arith.mulf %33, %35 : vector<32x384xf32>
      %c0_13 = arith.constant 0 : index
      %c0_14 = arith.constant 0 : index
      %37 = vector.load %arg10[%c0_13, %c0_14] : memref<32x1xf32, #tpu.memory_space<vmem>>, vector<32x1xf32>
      %38 = vector.broadcast %37 : vector<32x1xf32> to vector<32x384xf32>
      %39 = arith.addf %36, %38 : vector<32x384xf32>
      %cst_15 = arith.constant 0.000000e+00 : f32
      %40 = vector.broadcast %cst_15 : f32 to vector<32x384xf32>
      %41 = arith.maximumf %39, %40 : vector<32x384xf32>
      %c0_16 = arith.constant 0 : index
      %c0_17 = arith.constant 0 : index
      %42 = vector.load %arg4[%c0_16, %c0_17] : memref<16x32xbf16, #tpu.memory_space<vmem>>, vector<16x32xbf16>
      %43 = arith.truncf %41 : vector<32x384xf32> to vector<32x384xbf16>
      %cst_18 = arith.constant dense<0.000000e+00> : vector<16x384xf32>
      %44 = tpu.matmul %42, %43, %cst_18 {dimension_numbers = #tpu.dot_dimension_numbers<[1], [0], [0], [1], [0, 0, 1, 1], [], []>} : vector<16x32xbf16>, vector<32x384xbf16>, vector<16x384xf32> -> vector<16x384xf32>
      %45 = vector.broadcast %2 : vector<16x1xf32> to vector<16x384xf32>
      %46 = arith.addf %44, %45 : vector<16x384xf32>
      %c0_19 = arith.constant 0 : index
      %c0_20 = arith.constant 0 : index
      %47 = vector.load %arg11[%c0_19, %c0_20] : memref<16x1xf32, #tpu.memory_space<vmem>>, vector<16x1xf32>
      %48 = vector.broadcast %47 : vector<16x1xf32> to vector<16x384xf32>
      %49 = arith.mulf %46, %48 : vector<16x384xf32>
      %c0_21 = arith.constant 0 : index
      %c0_22 = arith.constant 0 : index
      %50 = vector.load %arg12[%c0_21, %c0_22] : memref<16x1xf32, #tpu.memory_space<vmem>>, vector<16x1xf32>
      %51 = vector.broadcast %50 : vector<16x1xf32> to vector<16x384xf32>
      %52 = arith.addf %49, %51 : vector<16x384xf32>
      %cst_23 = arith.constant 0.000000e+00 : f32
      %53 = vector.broadcast %cst_23 : f32 to vector<16x384xf32>
      %54 = arith.maximumf %52, %53 : vector<16x384xf32>
      %c0_24 = arith.constant 0 : index
      %c0_25 = arith.constant 0 : index
      %55 = vector.load %arg5[%c0_24, %c0_25] : memref<8x16xbf16, #tpu.memory_space<vmem>>, vector<8x16xbf16>
      %56 = arith.truncf %54 : vector<16x384xf32> to vector<16x384xbf16>
      %cst_26 = arith.constant dense<0.000000e+00> : vector<8x384xf32>
      %57 = tpu.matmul %55, %56, %cst_26 {dimension_numbers = #tpu.dot_dimension_numbers<[1], [0], [0], [1], [0, 0, 1, 1], [], []>} : vector<8x16xbf16>, vector<16x384xbf16>, vector<8x384xf32> -> vector<8x384xf32>
      %58 = vector.broadcast %3 : vector<8x1xf32> to vector<8x384xf32>
      %59 = arith.addf %57, %58 : vector<8x384xf32>
      %cst_27 = arith.constant 0.000000e+00 : f32
      %60 = vector.broadcast %cst_27 : f32 to vector<8x384xf32>
      %61 = arith.maximumf %59, %60 : vector<8x384xf32>
      %c0_28 = arith.constant 0 : index
      %c0_29 = arith.constant 0 : index
      %62 = vector.load %arg6[%c0_28, %c0_29] : memref<8x8xbf16, #tpu.memory_space<vmem>>, vector<8x8xbf16>
      %63 = arith.truncf %61 : vector<8x384xf32> to vector<8x384xbf16>
      %cst_30 = arith.constant dense<0.000000e+00> : vector<8x384xf32>
      %64 = tpu.matmul %62, %63, %cst_30 {dimension_numbers = #tpu.dot_dimension_numbers<[1], [0], [0], [1], [0, 0, 1, 1], [], []>} : vector<8x8xbf16>, vector<8x384xbf16>, vector<8x384xf32> -> vector<8x384xf32>
      %65 = vector.broadcast %4 : vector<8x1xf32> to vector<8x384xf32>
      %66 = arith.addf %64, %65 : vector<8x384xf32>
      %c0_31 = arith.constant 0 : index
      %c0_32 = arith.constant 0 : index
      %67 = vector.load %arg8[%c0_31, %c0_32] : memref<8x384xf32, #tpu.memory_space<vmem>>, vector<8x384xf32>
      tpu.vector_store %arg8[%c0_31, %c0_32], %66 {strides = array<i32>} : memref<8x384xf32, #tpu.memory_space<vmem>>, vector<8x384xf32>,
    } else {
    }
    return
  }
  func.func @transform_0(%arg0: i32, %arg1: i32) -> (i32, i32) {
    %c0_i32 = arith.constant 0 : i32
    %c0_i32_0 = arith.constant 0 : i32
    return %arg1, %c0_i32 : i32, i32
  }
  func.func @transform_1(%arg0: i32, %arg1: i32) -> (i32, i32) {
    %c0_i32 = arith.constant 0 : i32
    %c0_i32_0 = arith.constant 0 : i32
    %c0_i32_1 = arith.constant 0 : i32
    return %c0_i32, %c0_i32_0 : i32, i32
  }
  func.func @transform_2(%arg0: i32, %arg1: i32) -> (i32, i32) {
    %c0_i32 = arith.constant 0 : i32
    %c0_i32_0 = arith.constant 0 : i32
    %c0_i32_1 = arith.constant 0 : i32
    return %c0_i32, %c0_i32_0 : i32, i32
  }
  func.func @transform_3(%arg0: i32, %arg1: i32) -> (i32, i32) {
    %c0_i32 = arith.constant 0 : i32
    %c0_i32_0 = arith.constant 0 : i32
    %c0_i32_1 = arith.constant 0 : i32
    return %c0_i32, %c0_i32_0 : i32, i32
  }
  func.func @transform_4(%arg0: i32, %arg1: i32) -> (i32, i32) {
    %c0_i32 = arith.constant 0 : i32
    %c0_i32_0 = arith.constant 0 : i32
    %c0_i32_1 = arith.constant 0 : i32
    return %c0_i32, %c0_i32_0 : i32, i32
  }
  func.func @transform_5(%arg0: i32, %arg1: i32) -> (i32, i32) {
    %c0_i32 = arith.constant 0 : i32
    %c0_i32_0 = arith.constant 0 : i32
    %c0_i32_1 = arith.constant 0 : i32
    return %c0_i32, %c0_i32_0 : i32, i32
  }
  func.func @transform_6(%arg0: i32, %arg1: i32) -> (i32, i32) {
    %c2_i32 = arith.constant 2 : i32
    %0 = arith.cmpi eq, %arg0, %c2_i32 : i32
    %c0_i32 = arith.constant 0 : i32
    %1 = arith.select %0, %arg1, %c0_i32 : i32
    %c0_i32_0 = arith.constant 0 : i32
    %c0_i32_1 = arith.constant 0 : i32
    return %c0_i32_0, %1 : i32, i32
  }
}

</mosaic_0001>

<bundles_post_ra>
// kernel: tpu_custom_call.1
= control target key start
LH: loop header
LB: loop body
LE: loop exit
PB: predicated region body
PF: predicated region fallthrough
CT: control target
= control target key end

     0   :  { %11 = vsyncpa [#allocation7], 0  ;;  %s3673_s0 = inlined_call_operand.vmem [shape: bf16[384,16], index: 0, kind: input, shape index: {}]   ;;  %s3674_s1 = inlined_call_operand.vmem [shape: bf16[32,16], index: 1, kind: input, shape index: {}]   ;;  %s3675_s2 = inlined_call_operand.vmem [shape: bf16[16,32], index: 2, kind: input, shape index: {}]   ;;  %s3676_s3 = inlined_call_operand.vmem [shape: bf16[8,16], index: 3, kind: input, shape index: {}]   ;;  %s3677_s4 = inlined_call_operand.vmem [shape: bf16[8,8], index: 4, kind: input, shape index: {}]   ;;  %s3678_s5 = inlined_call_operand.vmem [shape: f32[32,8], index: 5, kind: input, shape index: {}]   ;;  %s3679_s6 = inlined_call_operand.hbm [shape: f32[8,384], index: 6, kind: output, shape index: {}]  }
   0x1   :  { %13 = vsyncpa [#allocation7 + $0x1], 0  ;;  %s2951_s21 = smov 0   ;;  %s2953_s22 = smov 0  }
   0x2   :  { %s2955_s23 = smov 0  }
   0x3 LB: > { %s2401_s24 = sadd.s32 4294967295, %s2893_s23   ;;  %s2402_s25 = sadd.s32 4294967294, %s2893_s23   ;;  %s2893_s23 = sphi %s2955_s23, %s19_s23   ;;  %s2889_s22 = sphi %s2953_s22, %s3794_s22   ;;  %s2885_s21 = sphi %s2951_s21, %s3793_s21  }
   0x4   : > { %s31_s26 = sadd.s32 1, %s2889_s22  ;;  %p2405_p0 = scmp.ge.s32.totalorder %s2893_s23, 1 }
   0x5   : > { %p33_p1 = scmp.ge.s32.totalorder %s31_s26, 3  ;;  %p232_p2 = scmp.lt.s32.totalorder %s2893_s23, 4 }
   0x7   : > { %s3796_s26 = smov (%p33_p1, %s31_s26), 0  ;;  %p233_p3 = pnand %p2405_p0, %p232_p2 }
   0x9   : > { %236 = sbr.rel (%p233_p3) target bundleno = 3041 (0xbe1), region = 44 }
   0xe   : > { %v2976_v0 = vld [vmem:[%s3678_s5] sm:$0xff]  ;;  %v2981_v1 = vld [vmem:[%s3678_s5 + $0x8] sm:$0xff]  ;;  %v2986_v2 = vld [vmem:[%s3678_s5 + $0x10] sm:$0xff]  ;;  %p336_p4 = scmp.eq.s32.totalorder %s2885_s21, 0  ;;  %v325_v42 = vlaneseq }
   0xf   : > { %v2992_v3 = vld [vmem:[%s3678_s5 + $0x18] sm:$0xff]  ;;  %v2997_v4 = vld [vmem:[%s3673_s0] sm:$0xf]  ;;  %v3002_v5 = vld [vmem:[%s3673_s0 + $0x4] sm:$0xf]  ;;  %vm342_vm1 = vcmask (%p336_p4), 7168  }
  0x10   : > { %3712 = vst [vmem:[#allocation9_spill] sm:$0xff] %v2992_v3  ;;  %3713 = vst [vmem:[#allocation10_spill] sm:$0xff] %v2997_v4  ;;  %v3007_v6 = vld [vmem:[%s3673_s0 + $0x8] sm:$0xf]  ;;  %v3012_v7 = vld [vmem:[%s3673_s0 + $0xc] sm:$0xf] }
  0x11   : > { %3714 = vst [vmem:[#allocation11_spill] sm:$0xff] %v3002_v5  ;;  %3715 = vst [vmem:[#allocation12_spill] sm:$0xff] %v3007_v6  ;;  %v3017_v8 = vld [vmem:[%s3673_s0 + $0x10] sm:$0xf]  ;;  %v3022_v9 = vld [vmem:[%s3673_s0 + $0x14] sm:$0xf] }
  0x12   : > { %3716 = vst [vmem:[#allocation13_spill] sm:$0xff] %v3012_v7  ;;  %3717 = vst [vmem:[#allocation14_spill] sm:$0xff] %v3017_v8  ;;  %v3027_v10 = vld [vmem:[%s3673_s0 + $0x18] sm:$0xf]  ;;  %v3032_v11 = vld [vmem:[%s3673_s0 + $0x1c] sm:$0xf] }
  0x13   : > { %3718 = vst [vmem:[#allocation15_spill] sm:$0xff] %v3022_v9  ;;  %3719 = vst [vmem:[#allocation16_spill] sm:$0xff] %v3027_v10  ;;  %v3037_v12 = vld [vmem:[%s3673_s0 + $0x20] sm:$0xf]  ;;  %v3042_v13 = vld [vmem:[%s3673_s0 + $0x24] sm:$0xf] }
  0x14   : > { %3720 = vst [vmem:[#allocation17_spill] sm:$0xff] %v3032_v11  ;;  %3721 = vst [vmem:[#allocation18_spill] sm:$0xff] %v3037_v12  ;;  %v3047_v14 = vld [vmem:[%s3673_s0 + $0x28] sm:$0xf]  ;;  %v3052_v15 = vld [vmem:[%s3673_s0 + $0x2c] sm:$0xf] }
  0x15   : > { %3722 = vst [vmem:[#allocation19_spill] sm:$0xff] %v3042_v13  ;;  %v3057_v16 = vld [vmem:[%s3673_s0 + $0x30] sm:$0xf]  ;;  %v3062_v17 = vld [vmem:[%s3673_s0 + $0x34] sm:$0xf]  ;;  %v326_v53 = vand.u32 127, %v325_v42 }
  0x16   : > { %v3067_v18 = vld [vmem:[%s3673_s0 + $0x38] sm:$0xf]  ;;  %v3072_v19 = vld [vmem:[%s3673_s0 + $0x3c] sm:$0xf]  ;;  %v3077_v20 = vld [vmem:[%s3673_s0 + $0x40] sm:$0xf] }
  0x17   : > { %3723 = vst [vmem:[#allocation20_spill] sm:$0xff] %v3077_v20  ;;  %v3082_v21 = vld [vmem:[%s3673_s0 + $0x44] sm:$0xf]  ;;  %v3087_v22 = vld [vmem:[%s3673_s0 + $0x48] sm:$0xf]  ;;  %v3234_v54 = vadd.s32 256, %v326_v53 }
  0x18   : > { %3724 = vst [vmem:[#allocation21_spill] sm:$0xff] %v3082_v21  ;;  %3725 = vst [vmem:[#allocation22_spill] sm:$0xff] %v3087_v22  ;;  %v3092_v23 = vld [vmem:[%s3673_s0 + $0x4c] sm:$0xf]  ;;  %v3097_v24 = vld [vmem:[%s3673_s0 + $0x50] sm:$0xf] }
  0x19   : > { %3726 = vst [vmem:[#allocation23_spill] sm:$0xff] %v3092_v23  ;;  %3727 = vst [vmem:[#allocation24_spill] sm:$0xff] %v3097_v24  ;;  %v3102_v25 = vld [vmem:[%s3673_s0 + $0x54] sm:$0xf]  ;;  %v3107_v26 = vld [vmem:[%s3673_s0 + $0x58] sm:$0xf] }
  0x1a   : > { %3728 = vst [vmem:[#allocation25_spill] sm:$0xff] %v3102_v25  ;;  %3729 = vst [vmem:[#allocation26_spill] sm:$0xff] %v3107_v26  ;;  %v3112_v27 = vld [vmem:[%s3673_s0 + $0x5c] sm:$0xf]  ;;  %v3117_v28 = vld [vmem:[%s3673_s0 + $0x60] sm:$0xf] }
  0x1b   : > { %3730 = vst [vmem:[#allocation27_spill] sm:$0xff] %v3112_v27  ;;  %3731 = vst [vmem:[#allocation28_spill] sm:$0xff] %v3117_v28  ;;  %v3122_v29 = vld [vmem:[%s3673_s0 + $0x64] sm:$0xf]  ;;  %v3127_v30 = vld [vmem:[%s3673_s0 + $0x68] sm:$0xf] }
  0x1c   : > { %3732 = vst [vmem:[#allocation29_spill] sm:$0xff] %v3122_v29  ;;  %v3132_v31 = vld [vmem:[%s3673_s0 + $0x6c] sm:$0xf]  ;;  %v3137_v32 = vld [vmem:[%s3673_s0 + $0x70] sm:$0xf]  ;;  %vm335_vm0 = vcmp.lt.s32.totalorder %v3234_v54, 300 }
  0x1d   : > { %v3142_v33 = vld [vmem:[%s3673_s0 + $0x74] sm:$0xf]  ;;  %v3147_v34 = vld [vmem:[%s3673_s0 + $0x78] sm:$0xf]  ;;  %v3152_v35 = vld [vmem:[%s3673_s0 + $0x7c] sm:$0xf] }
  0x1e   : > { %v3157_v36 = vld [vmem:[%s3673_s0 + $0x80] sm:$0xf]  ;;  %v3162_v37 = vld [vmem:[%s3673_s0 + $0x84] sm:$0xf]  ;;  %v3167_v38 = vld [vmem:[%s3673_s0 + $0x88] sm:$0xf] }
  0x1f   : > { %3733 = vst [vmem:[#allocation30_spill] sm:$0xff] %v3157_v36  ;;  %3734 = vst [vmem:[#allocation31_spill] sm:$0xff] %v3162_v37  ;;  %v3172_v39 = vld [vmem:[%s3673_s0 + $0x8c] sm:$0xf]  ;;  %v3177_v40 = vld [vmem:[%s3673_s0 + $0x90] sm:$0xf] }
  0x20   : > { %3735 = vst [vmem:[#allocation32_spill] sm:$0xff] %v3167_v38  ;;  %3736 = vst [vmem:[#allocation33_spill] sm:$0xff] %v3172_v39  ;;  %v3182_v41 = vld [vmem:[%s3673_s0 + $0x94] sm:$0xf]  ;;  %v3187_v43 = vld [vmem:[%s3673_s0 + $0x98] sm:$0xf] }
  0x21   : > { %3737 = vst [vmem:[#allocation34_spill] sm:$0xff] %v3177_v40  ;;  %3738 = vst [vmem:[#allocation35_spill] sm:$0xff] %v3182_v41  ;;  %v3192_v44 = vld [vmem:[%s3673_s0 + $0x9c] sm:$0xf]  ;;  %v3197_v45 = vld [vmem:[%s3673_s0 + $0xa0] sm:$0xf] }
  0x22   : > { %3739 = vst [vmem:[#allocation36_spill] sm:$0xff] %v3187_v43  ;;  %3740 = vst [vmem:[#allocation37_spill] sm:$0xff] %v3192_v44  ;;  %v3202_v46 = vld [vmem:[%s3673_s0 + $0xa4] sm:$0xf]  ;;  %v3207_v47 = vld [vmem:[%s3673_s0 + $0xa8] sm:$0xf] }
  0x23   : > { %3741 = vst [vmem:[#allocation38_spill] sm:$0xff] %v3197_v45  ;;  %3742 = vst [vmem:[#allocation39_spill] sm:$0xff] %v3202_v46  ;;  %v3212_v48 = vld [vmem:[%s3673_s0 + $0xac] sm:$0xf]  ;;  %v3217_v49 = vld [vmem:[%s3673_s0 + $0xb0] sm:$0xf] }
  0x24   : > { %v3222_v50 = vld [vmem:[%s3673_s0 + $0xb4] sm:$0xf]  ;;  %v3227_v51 = vld [vmem:[%s3673_s0 + $0xb8] sm:$0xf]  ;;  %v3232_v52 = vld [vmem:[%s3673_s0 + $0xbc] sm:$0xf] }
  0x25   : > { %341 = sbr.rel (!%p336_p4) target bundleno = 44 (0x2c), region = 48  ;;  %v2895_v55 = vmov (%p336_p4), 0.0  }
  0x26   : > { %343 = vst.msk [vmem:[#allocation2] sm:$0xff] (%p336_p4), %vm342_vm1, %v2895_v55  ;;  %344 = vst.msk [vmem:[#allocation2 + $0x8] sm:$0xff] (%p336_p4), %vm342_vm1, %v2895_v55 }
  0x27   : > { %345 = vst.msk [vmem:[#allocation2 + $0x10] sm:$0xff] (%p336_p4), %vm342_vm1, %v2895_v55  ;;  %346 = vst.msk [vmem:[#allocation2 + $0x18] sm:$0xff] (%p336_p4), %vm342_vm1, %v2895_v55 }
  0x28   : > { %347 = vst.msk [vmem:[#allocation3] sm:$0xff] (%p336_p4), %vm342_vm1, %v2895_v55  ;;  %348 = vst.msk [vmem:[#allocation3 + $0x8] sm:$0xff] (%p336_p4), %vm342_vm1, %v2895_v55 }
  0x29   : > { %349 = vst.msk [vmem:[#allocation3 + $0x10] sm:$0xff] (%p336_p4), %vm342_vm1, %v2895_v55  ;;  %350 = vst.msk [vmem:[#allocation3 + $0x18] sm:$0xff] (%p336_p4), %vm342_vm1, %v2895_v55 }
  0x2a   : > { %351 = vst.msk [vmem:[#allocation4] sm:$0xff] %vm342_vm1, %v2895_v55  ;;  %352 = vst.msk [vmem:[#allocation4 + $0x8] sm:$0xff] %vm342_vm1, %v2895_v55 }
  0x2b   : > { %353 = vst.msk [vmem:[#allocation5] sm:$0xff] %vm342_vm1, %v2895_v55  ;;  %354 = vst.msk [vmem:[#allocation5 + $0x8] sm:$0xff] %vm342_vm1, %v2895_v55 }
  0x2c PF: > { %p2407_p5 = scmp.ne.s32.totalorder %s2885_s21, 0 }
  0x2d   : > { %s2897_s27 = smov (!%p2407_p5), 4   ;;  %s2898_s28 = smov (!%p2407_p5), 124  }
  0x2e   : > { %357 = sbr.rel (%p2407_p5) target bundleno = 971 (0x3cb), region = 52  ;;  %s2899_s29 = smov (!%p2407_p5), 5  }
  0x2f   : > { %s2900_s30 = smov (!%p2407_p5), 123  }
  0x33   : > { %v2425_v56 = vcombine.low %v3147_v34, %v3152_v35  ;;  %vm512_vm2 = vcmask 130048   ;;  %v2433_v57 = vcombine.low %v3227_v51, %v3232_v52  ;;  %v2417_v58 = vcombine.low %v3067_v18, %v3072_v19  ;;  %v3253_v61 = vld [vmem:[%s3674_s1] sm:$0xff]  }
  0x34   : > { %v2424_v59 = vcombine.low %v3137_v32, %v3142_v33  ;;  %v2432_v60 = vcombine.low %v3217_v49, %v3222_v50  ;;  %v2416_v42 = vcombine.low %v3057_v16, %v3062_v17  ;;  %2532 = vmatprep.mubr.msk.bf16.mxu0 %vm512_vm2, %v3253_v61  ;;  %2632 = vmatprep.mubr.msk.bf16.mxu1 %vm512_vm2, %v3253_v61  ;;  %vm735_vm3 = vcmask 7168  }
  0x35   : > { %2704 = vmatprep.subr.msk.bf16.mxu0 %vm512_vm2, %v2425_v56  ;;  %2712 = vmatprep.subr.msk.bf16.mxu1 %vm512_vm2, %v2433_v57  ;;  %v541_v62 = vsel %vm512_vm2, %v2417_v58, 0  ;;  %v589_v63 = vsel %vm512_vm2, %v2433_v57, 0  ;;  %v2423_v56 = vcombine.low %v3127_v30, %v3132_v31  ;;  %v2431_v57 = vcombine.low %v3207_v47, %v3212_v48 }
  0x36   : > { %2517 = vmatpush3.bf16.xpose.msra.mxu0 %v541_v62  ;;  %2617 = vmatpush3.bf16.xpose.msra.mxu1 %v589_v63  ;;  %v538_v53 = vsel %vm512_vm2, %v2416_v42, 0  ;;  %v586_v55 = vsel %vm512_vm2, %v2432_v60, 0  ;;  %v2896_v58 = vmov 0   ;;  %v2422_v63 = vcombine.low %v3117_v28, %v3122_v29 }
  0x37   : > { %2705 = vmatprep.subr.msk.bf16.mxu0 %vm512_vm2, %v2424_v59  ;;  %2713 = vmatprep.subr.msk.bf16.mxu1 %vm512_vm2, %v2432_v60  ;;  %v2415_v59 = vcombine.low %v3047_v14, %v3052_v15  ;;  %v583_v62 = vsel %vm512_vm2, %v2431_v57, 0  ;;  %v2430_v42 = vcombine.low %v3197_v45, %v3202_v46 }
  0x38   : > { %2808 = vset.pattern.permute.xlu0 %v2896_v58  ;;  %2809 = vset.pattern.permute.xlu1 %v2896_v58  ;;  %v2429_v58 = vcombine.low %v3187_v43, %v3192_v44 }
  0x39   : > { %364 = vperm.xlu0 %2808, %v2976_v0   ;;  %374 = vperm.xlu1 %2809, %v2986_v2   ;;  %v535_v60 = vsel %vm512_vm2, %v2415_v59, 0  ;;  %v2413_v59 = vcombine.low %v3027_v10, %v3032_v11 }
  0x3d   : > { %369 = vperm.xlu0 %2808, %v2981_v1   ;;  %379 = vperm.xlu1 %2809, %v2992_v3  }
  0x3e   : > { %2519 = vmatpush3.bf16.xpose.msra.mxu0 %v538_v53  ;;  %2619 = vmatpush3.bf16.xpose.msra.mxu1 %v586_v55  ;;  %v2414_v53 = vcombine.low %v3037_v12, %v3042_v13 }
  0x3f   : > { %2706 = vmatprep.subr.msk.bf16.mxu0 %vm512_vm2, %v2423_v56  ;;  %2714 = vmatprep.subr.msk.bf16.mxu1 %vm512_vm2, %v2431_v57  ;;  %v580_v56 = vsel %vm512_vm2, %v2430_v42, 0  ;;  %v2421_v57 = vcombine.low %v3107_v26, %v3112_v27 }
  0x40   : > { %v532_v55 = vsel %vm512_vm2, %v2414_v53, 0  ;;  %v2412_v53 = vcombine.low %v3017_v8, %v3022_v9 }
  0x46   : > { %2521 = vmatpush3.bf16.xpose.msra.mxu0 %v535_v60  ;;  %2621 = vmatpush3.bf16.xpose.msra.mxu1 %v583_v62  ;;  %v529_v60 = vsel %vm512_vm2, %v2413_v59, 0  ;;  %v577_v62 = vsel %vm512_vm2, %v2429_v58, 0  ;;  %v2411_v59 = vcombine.low %v3007_v6, %v3012_v7 }
  0x47   : > { %2707 = vmatprep.subr.msk.bf16.mxu0 %vm512_vm2, %v2422_v63  ;;  %2715 = vmatprep.subr.msk.bf16.mxu1 %vm512_vm2, %v2430_v42  ;;  %v2420_v63 = vcombine.low %v3097_v24, %v3102_v25  ;;  %v2428_v42 = vcombine.low %v3177_v40, %v3182_v41 }
  0x4e   : > { %2523 = vmatpush3.bf16.xpose.msra.mxu0 %v532_v55  ;;  %2623 = vmatpush3.bf16.xpose.msra.mxu1 %v580_v56  ;;  %v526_v55 = vsel %vm512_vm2, %v2412_v53, 0  ;;  %v574_v56 = vsel %vm512_vm2, %v2428_v42, 0  ;;  %v2410_v53 = vcombine.low %v2997_v4, %v3002_v5 }
  0x4f   : > { %2708 = vmatprep.subr.msk.bf16.mxu0 %vm512_vm2, %v2421_v57  ;;  %2716 = vmatprep.subr.msk.bf16.mxu1 %vm512_vm2, %v2429_v58  ;;  %v2419_v57 = vcombine.low %v3087_v22, %v3092_v23  ;;  %v2427_v58 = vcombine.low %v3167_v38, %v3172_v39 }
  0x56   : > { %2525 = vmatpush3.bf16.xpose.msra.mxu0 %v529_v60  ;;  %2625 = vmatpush3.bf16.xpose.msra.mxu1 %v577_v62  ;;  %v523_v60 = vsel %vm512_vm2, %v2411_v59, 0  ;;  %v571_v62 = vsel %vm512_vm2, %v2427_v58, 0 }
  0x57   : > { %2709 = vmatprep.subr.msk.bf16.mxu0 %vm512_vm2, %v2420_v63  ;;  %2717 = vmatprep.subr.msk.bf16.mxu1 %vm512_vm2, %v2428_v42  ;;  %v2418_v63 = vcombine.low %v3077_v20, %v3082_v21  ;;  %v2426_v42 = vcombine.low %v3157_v36, %v3162_v37 }
  0x5e   : > { %2527 = vmatpush3.bf16.xpose.msra.mxu0 %v526_v55  ;;  %2627 = vmatpush3.bf16.xpose.msra.mxu1 %v574_v56  ;;  %v520_v55 = vsel %vm512_vm2, %v2410_v53, 0  ;;  %v568_v56 = vsel %vm512_vm2, %v2426_v42, 0 }
  0x5f   : > { %2710 = vmatprep.subr.msk.bf16.mxu0 %vm512_vm2, %v2419_v57  ;;  %2718 = vmatprep.subr.msk.bf16.mxu1 %vm512_vm2, %v2427_v58  ;;  %v2811_v57 = vld [vmem:[%s3674_s1 + $0x8] sm:$0xff]  }
  0x66   : > { %2529 = vmatpush3.bf16.xpose.msra.mxu0 %v523_v60  ;;  %2629 = vmatpush3.bf16.xpose.msra.mxu1 %v571_v62 }
  0x67   : > { %2711 = vmatprep.subr.msk.bf16.mxu0 %vm512_vm2, %v2418_v63  ;;  %2719 = vmatprep.subr.msk.bf16.mxu1 %vm512_vm2, %v2426_v42 }
  0x6e   : > { %2531 = vmatpush3.bf16.xpose.msra.mxu0 %v520_v55  ;;  %2631 = vmatpush3.bf16.xpose.msra.mxu1 %v568_v56 }
  0x75   : > { %2533 = vmatmul.mubr.msk.bf16.vlgmr.msra.gmra.mxu0 %vm512_vm2, %v3253_v61  ;;  %2633 = vmatmul.mubr.msk.bf16.vlgmr.msra.gmra.mxu1 %vm512_vm2, %v2811_v57 }
  0x76   : > { %2534 = vmatprep.mubr.msk.bf16.mxu0 %vm512_vm2, %v2811_v57 }
  0x7d   : > { %2535 = vmatmul.mubr.msk.bf16.gmra.mxu0 %vm512_vm2, %v2811_v57 }
  0xb4   : > { %v365_v58 = vpop.permute.xlu0 %364  ;;  %v375_v36 = vpop.permute.xlu1 %374 }
  0xb8   : > { %v370_v53 = vpop.permute.xlu0 %369 }
 0x135   : > { %v625_v59 = vpop.f32.mrf.mxu0  ;;  %v2634_v60 = vpop.f32.mrf.mxu1 }
 0x136   : > { %v626_v62 = vadd.f32 %v625_v59, %v365_v58  ;;  %v687_v23 = vadd.f32 %v2634_v60, %v375_v36 }
 0x137   : > { %v627_v63 = vpop.f32.mrf.mxu0  ;;  %v678_v42 = vpop.f32.mrf.mxu1 }
 0x138   : > { %v628_v55 = vadd.f32 %v627_v63, %v365_v58  ;;  %v679_v56 = vadd.f32 %v678_v42, %v365_v58  ;;  %v744_v6 = vmul.f32 %v626_v62, %v626_v62 }
 0x139   : > { %v629_v4 = vpop.f32.mrf.mxu0  ;;  %v2635_v5 = vpop.f32.mrf.mxu1 }
 0x13a   : > { %v715_v37 = vadd.f32 %v628_v55, %v626_v62  ;;  %v745_v61 = vmul.f32 %v628_v55, %v628_v55  ;;  %v701_v20 = vsel %vm335_vm0, %v679_v56, 0.0  ;;  %v630_v21 = vadd.f32 %v629_v4, %v370_v53 }
 0x13b   : > { %v746_v57 = vmul.f32 %v701_v20, %v701_v20  ;;  %v631_v7 = vpop.f32.mrf.mxu0  ;;  %v681_v38 = vpop.f32.mrf.mxu1 }
 0x13c   : > { %v632_v39 = vadd.f32 %v631_v7, %v370_v53  ;;  %v682_v59 = vadd.f32 %v681_v38, %v370_v53  ;;  %v716_v22 = vadd.f32 %v715_v37, %v701_v20  ;;  %v756_v63 = vadd.f32 %v745_v61, %v744_v6  ;;  %v380_v6 = vpop.permute.xlu1 %379 }
 0x13d   : > { %v635_v8 = vpop.f32.mrf.mxu0  ;;  %v747_v58 = vmul.f32 %v630_v21, %v630_v21  ;;  %v707_v7 = vsel %vm335_vm0, %v687_v23, 0.0 }
 0x13e   : > { %v748_v42 = vmul.f32 %v632_v39, %v632_v39  ;;  %v704_v9 = vsel %vm335_vm0, %v682_v59, 0.0  ;;  %717 = vadd.xlane.f32.xlu0 %v716_v22  ;;  %v719_v55 = vadd.f32 %v632_v39, %v630_v21  ;;  %v636_v56 = vadd.f32 %v635_v8, %v375_v36 }
 0x13f   : > { %v749_v40 = vmul.f32 %v704_v9, %v704_v9  ;;  %v637_v4 = vpop.f32.mrf.mxu0  ;;  %v757_v62 = vadd.f32 %v756_v63, %v746_v57  ;;  %v752_v22 = vmul.f32 %v707_v7, %v707_v7  ;;  %v690_v57 = vadd.f32 %v2635_v5, %v380_v6 }
 0x140   : > { %v638_v41 = vadd.f32 %v637_v4, %v375_v36  ;;  %v760_v24 = vadd.f32 %v748_v42, %v747_v58  ;;  %v750_v20 = vmul.f32 %v636_v56, %v636_v56  ;;  %v720_v59 = vadd.f32 %v719_v55, %v704_v9  ;;  %v711_v55 = vld [vmem:[#allocation2] sm:$0xff] }
 0x141   : > { %758 = vadd.xlane.f32.xlu1 %v757_v62  ;;  %v639_v37 = vpop.f32.mrf.mxu0  ;;  %v740_v62 = vld [vmem:[#allocation3] sm:$0xff] }
 0x142   : > { %v723_v38 = vadd.f32 %v638_v41, %v636_v56  ;;  %v751_v60 = vmul.f32 %v638_v41, %v638_v41  ;;  %v761_v53 = vadd.f32 %v760_v24, %v749_v40  ;;  %v640_v21 = vadd.f32 %v639_v37, %v380_v6  ;;  %v741_v37 = vld [vmem:[#allocation3 + $0x8] sm:$0xff] }
 0x143   : > { %v641_v61 = vpop.f32.mrf.mxu0  ;;  %v710_v56 = vsel %vm335_vm0, %v690_v57, 0.0 }
 0x144   : > { %v642_v39 = vadd.f32 %v641_v61, %v380_v6  ;;  %762 = vadd.xlane.f32.xlu0 %v761_v53  ;;  %v764_v8 = vadd.f32 %v751_v60, %v750_v20  ;;  %v724_v23 = vadd.f32 %v723_v38, %v707_v7  ;;  %v753_v42 = vmul.f32 %v640_v21, %v640_v21  ;;  %v712_v6 = vld [vmem:[#allocation2 + $0x8] sm:$0xff] }
 0x145   : > { %721 = vadd.xlane.f32.xlu1 %v720_v59  ;;  %v755_v9 = vmul.f32 %v710_v56, %v710_v56  ;;  %v713_v59 = vld [vmem:[#allocation2 + $0x10] sm:$0xff] }
 0x146   : > { %v727_v36 = vadd.f32 %v642_v39, %v640_v21  ;;  %v754_v63 = vmul.f32 %v642_v39, %v642_v39  ;;  %v765_v58 = vadd.f32 %v764_v8, %v752_v22  ;;  %v742_v22 = vld [vmem:[#allocation3 + $0x10] sm:$0xff] }
 0x148   : > { %725 = vadd.xlane.f32.xlu0 %v724_v23  ;;  %v728_v24 = vadd.f32 %v727_v36, %v710_v56  ;;  %v768_v40 = vadd.f32 %v754_v63, %v753_v42 }
 0x149   : > { %766 = vadd.xlane.f32.xlu1 %v765_v58  ;;  %v714_v58 = vld [vmem:[#allocation2 + $0x18] sm:$0xff] }
 0x14a   : > { %v769_v41 = vadd.f32 %v768_v40, %v755_v9  ;;  %v743_v9 = vld [vmem:[#allocation3 + $0x18] sm:$0xff] }
 0x14c   : > { %729 = vadd.xlane.f32.xlu0 %v728_v24 }
 0x150   : > { %770 = vadd.xlane.f32.xlu0 %v769_v41 }
 0x1c7   : > { %v718_v5 = vpop.xlane.xlu0 %717 }
 0x1c8   : > { %v731_v4 = vadd.f32 %v718_v5, %v711_v55 }
 0x1ca   : > { %736 = vst.msk [vmem:[#allocation2] sm:$0xff] %vm735_vm3, %v731_v4  ;;  %v759_v7 = vpop.xlane.xlu1 %758 }
 0x1cb   : > { %v772_v20 = vadd.f32 %v759_v7, %v740_v62 }
 0x1cd   : > { %776 = vst.msk [vmem:[#allocation3] sm:$0xff] %vm735_vm3, %v772_v20  ;;  %v763_v38 = vpop.xlane.xlu0 %762 }
 0x1ce   : > { %v722_v60 = vpop.xlane.xlu1 %721  ;;  %v773_v53 = vadd.f32 %v763_v38, %v741_v37 }
 0x1cf   : > { %v732_v61 = vadd.f32 %v722_v60, %v712_v6 }
 0x1d0   : > { %777 = vst.msk [vmem:[#allocation3 + $0x8] sm:$0xff] %vm735_vm3, %v773_v53 }
 0x1d1   : > { %v783_v21 = vld [vmem:[#allocation2] sm:$0xff]  ;;  %737 = vst.msk [vmem:[#allocation2 + $0x8] sm:$0xff] %vm735_vm3, %v732_v61  ;;  %v726_v39 = vpop.xlane.xlu0 %725 }
 0x1d2   : > { %v767_v8 = vpop.xlane.xlu1 %766  ;;  %v733_v57 = vadd.f32 %v726_v39, %v713_v59  ;;  %v3353_v36 = vmul.f32 0.0033333334, %v783_v21 }
 0x1d3   : > { %v774_v63 = vadd.f32 %v767_v8, %v742_v22 }
 0x1d4   : > { %738 = vst.msk [vmem:[#allocation2 + $0x10] sm:$0xff] %vm735_vm3, %v733_v57  ;;  %v791_v23 = vld [vmem:[#allocation3] sm:$0xff]  ;;  %v799_v42 = vmul.f32 %v3353_v36, %v3353_v36 }
 0x1d5   : > { %778 = vst.msk [vmem:[#allocation3 + $0x10] sm:$0xff] %vm735_vm3, %v774_v63  ;;  %v730_v56 = vpop.xlane.xlu0 %729  ;;  %v795_v24 = vmul.f32 0.0033333334, %v791_v23 }
 0x1d6   : > { %v734_v40 = vadd.f32 %v730_v56, %v714_v58 }
 0x1d7   : > { %v803_v41 = vsub.f32 %v795_v24, %v799_v42  ;;  %v792_v5 = vld [vmem:[#allocation3 + $0x8] sm:$0xff] }
 0x1d8   : > { %v784_v55 = vld [vmem:[#allocation2 + $0x8] sm:$0xff]  ;;  %739 = vst.msk [vmem:[#allocation2 + $0x18] sm:$0xff] %vm735_vm3, %v734_v40  ;;  %v796_v6 = vmul.f32 0.0033333334, %v792_v5 }
 0x1d9   : > { %v771_v4 = vpop.xlane.xlu0 %770  ;;  %v807_v62 = vadd.f32 1e-05, %v803_v41  ;;  %v788_v7 = vmul.f32 0.0033333334, %v784_v55 }
 0x1da   : > { %v775_v20 = vadd.f32 %v771_v4, %v743_v9 }
 0x1db   : > { %v785_v37 = vld [vmem:[#allocation2 + $0x10] sm:$0xff]  ;;  %2812 = vrsqrt.f32 %v807_v62  ;;  %v800_v38 = vmul.f32 %v788_v7, %v788_v7 }
 0x1dc   : > { %779 = vst.msk [vmem:[#allocation3 + $0x18] sm:$0xff] %vm735_vm3, %v775_v20  ;;  %v789_v60 = vmul.f32 0.0033333334, %v785_v37  ;;  %v793_v53 = vld [vmem:[#allocation3 + $0x10] sm:$0xff] }
 0x1dd   : > { %v804_v61 = vsub.f32 %v796_v6, %v800_v38  ;;  %v797_v59 = vmul.f32 0.0033333334, %v793_v53 }
 0x1de   : > { %v801_v22 = vmul.f32 %v789_v60, %v789_v60 }
 0x1df   : > { %v786_v21 = vld [vmem:[#allocation2 + $0x18] sm:$0xff]  ;;  %v808_v39 = vadd.f32 1e-05, %v804_v61 }
 0x1e0   : > { %v805_v8 = vsub.f32 %v797_v59, %v801_v22  ;;  %v790_v57 = vmul.f32 0.0033333334, %v786_v21 }
 0x1e1   : > { %2814 = vrsqrt.f32 %v808_v39 }
 0x1e2   : > { %v809_v63 = vadd.f32 1e-05, %v805_v8  ;;  %v802_v42 = vmul.f32 %v790_v57, %v790_v57 }
 0x1e3   : > { %v794_v58 = vld [vmem:[#allocation3 + $0x18] sm:$0xff] }
 0x1e4   : > { %2816 = vrsqrt.f32 %v809_v63  ;;  %v798_v23 = vmul.f32 0.0033333334, %v794_v58 }
 0x1e6   : > { %v806_v56 = vsub.f32 %v798_v23, %v802_v42 }
 0x1e8   : > { %v2813_v24 = vpop.eup %2812  ;;  %v810_v40 = vadd.f32 1e-05, %v806_v56 }
 0x1e9   : > { %819 = vrot.lane.b32.xlu1 %v2813_v24, %s2897_s27 }
 0x1ea   : > { %2818 = vrsqrt.f32 %v810_v40 }
 0x1ee   : > { %v2815_v9 = vpop.eup %2814 }
 0x1ef   : > { %821 = vrot.lane.b32.xlu0 %v2815_v9, %s2897_s27 }
 0x1f1   : > { %v2817_v41 = vpop.eup %2816 }
 0x1f2   : > { %823 = vrot.lane.b32.xlu1 %v2817_v41, %s2897_s27 }
 0x1f7   : > { %v2819_v55 = vpop.eup %2818 }
 0x1f8   : > { %825 = vrot.lane.b32.xlu1 %v2819_v55, %s2897_s27 }
 0x25b   : > { %v820_v5 = vpop.permute.xlu1 %819 }
 0x25c   : > { %v831_v4 = vmul.f32 %v820_v5, %v2976_v0 }
 0x25e   : > { %839 = vrot.lane.b32.xlu0 %v831_v4, %s2898_s28 }
 0x261   : > { %v822_v62 = vpop.permute.xlu0 %821 }
 0x262   : > { %v832_v20 = vmul.f32 %v822_v62, %v2981_v1 }
 0x264   : > { %841 = vrot.lane.b32.xlu1 %v832_v20, %s2898_s28  ;;  %v824_v37 = vpop.permute.xlu1 %823 }
 0x265   : > { %v833_v6 = vmul.f32 %v824_v37, %v2986_v2 }
 0x267   : > { %843 = vrot.lane.b32.xlu0 %v833_v6, %s2898_s28 }
 0x26a   : > { %v826_v38 = vpop.permute.xlu1 %825 }
 0x26b   : > { %v834_v53 = vmul.f32 %v826_v38, %v2992_v3 }
 0x26d   : > { %845 = vrot.lane.b32.xlu1 %v834_v53, %s2898_s28 }
 0x2d0   : > { %v840_v61 = vpop.permute.xlu0 %839 }
 0x2d1   : > { %v851_v59 = vmul.f32 %v840_v61, %v3353_v36  ;;  %875 = vst.msk [vmem:[#allocation2] sm:$0xff] %vm735_vm3, %v840_v61 }
 0x2d3   : > { %859 = vrot.lane.b32.xlu0 %v851_v59, %s2899_s29 }
 0x2d6   : > { %v842_v22 = vpop.permute.xlu1 %841 }
 0x2d7   : > { %v852_v21 = vmul.f32 %v842_v22, %v788_v7  ;;  %876 = vst.msk [vmem:[#allocation2 + $0x8] sm:$0xff] %vm735_vm3, %v842_v22 }
 0x2d9   : > { %861 = vrot.lane.b32.xlu1 %v852_v21, %s2899_s29  ;;  %v844_v39 = vpop.permute.xlu0 %843 }
 0x2da   : > { %v853_v8 = vmul.f32 %v844_v39, %v789_v60  ;;  %877 = vst.msk [vmem:[#allocation2 + $0x10] sm:$0xff] %vm735_vm3, %v844_v39 }
 0x2dc   : > { %863 = vrot.lane.b32.xlu0 %v853_v8, %s2899_s29 }
 0x2df   : > { %v846_v63 = vpop.permute.xlu1 %845 }
 0x2e0   : > { %v854_v58 = vmul.f32 %v846_v63, %v790_v57  ;;  %878 = vst.msk [vmem:[#allocation2 + $0x18] sm:$0xff] %vm735_vm3, %v846_v63 }
 0x2e2   : > { %865 = vrot.lane.b32.xlu1 %v854_v58, %s2899_s29 }
 0x345   : > { %v860_v36 = vpop.permute.xlu0 %859 }
 0x346   : > { %v871_v23 = vsub.f32 %v2976_v0, %v860_v36 }
 0x348   : > { %883 = vrot.lane.b32.xlu0 %v871_v23, %s2900_s30 }
 0x34b   : > { %v862_v42 = vpop.permute.xlu1 %861 }
 0x34c   : > { %v872_v7 = vsub.f32 %v2981_v1, %v862_v42 }
 0x34e   : > { %885 = vrot.lane.b32.xlu1 %v872_v7, %s2900_s30  ;;  %v864_v56 = vpop.permute.xlu0 %863 }
 0x34f   : > { %v873_v60 = vsub.f32 %v2986_v2, %v864_v56 }
 0x351   : > { %887 = vrot.lane.b32.xlu0 %v873_v60, %s2900_s30 }
 0x354   : > { %v866_v24 = vpop.permute.xlu1 %865 }
 0x355   : > { %v874_v40 = vsub.f32 %v2992_v3, %v866_v24 }
 0x357   : > { %889 = vrot.lane.b32.xlu1 %v874_v40, %s2900_s30 }
 0x3ba   : > { %v884_v57 = vpop.permute.xlu0 %883 }
 0x3bb   : > { %895 = vst.msk [vmem:[#allocation3] sm:$0xff] %vm735_vm3, %v884_v57 }
 0x3c0   : > { %v886_v9 = vpop.permute.xlu1 %885 }
 0x3c1   : > { %896 = vst.msk [vmem:[#allocation3 + $0x8] sm:$0xff] %vm735_vm3, %v886_v9 }
 0x3c3   : > { %v888_v41 = vpop.permute.xlu0 %887 }
 0x3c4   : > { %897 = vst.msk [vmem:[#allocation3 + $0x10] sm:$0xff] %vm735_vm3, %v888_v41 }
 0x3c9   : > { %v890_v55 = vpop.permute.xlu1 %889 }
 0x3ca   : > { %898 = vst.msk [vmem:[#allocation3 + $0x18] sm:$0xff] %vm735_vm3, %v890_v55 }
 0x3cb PF: > { %p2438_p6 = scmp.ne.s32.totalorder %s2885_s21, 1 }
 0x3cc   : > { %s2905_s13 = smov (!%p2438_p6), 6   ;;  %s2906_s14 = smov (!%p2438_p6), 122  }
 0x3cd   : > { %902 = sbr.rel (%p2438_p6) target bundleno = 2113 (0x841), region = 60  ;;  %s2907_s15 = smov (!%p2438_p6), 7  }
 0x3ce   : > { %s2908_s16 = smov (!%p2438_p6), 121  }
 0x3d2   : > { %v2456_v5 = vcombine.low %v3147_v34, %v3152_v35  ;;  %vm1057_vm4 = vcmask 130048   ;;  %v2464_v4 = vcombine.low %v3227_v51, %v3232_v52  ;;  %v2448_v62 = vcombine.low %v3067_v18, %v3072_v19  ;;  %v3392_v6 = vld [vmem:[%s3674_s1] sm:$0xff]   ;;  %v1240_v63 = vld [vmem:[#allocation2 + $0x10] sm:$0xff]  ;;  %v1241_v36 = vld [vmem:[#allocation2 + $0x18] sm:$0xff] }
 0x3d3   : > { %v2455_v20 = vcombine.low %v3137_v32, %v3142_v33  ;;  %v2463_v37 = vcombine.low %v3217_v49, %v3222_v50  ;;  %v2447_v61 = vcombine.low %v3057_v16, %v3062_v17  ;;  %2562 = vmatprep.mubr.msk.bf16.mxu0 %vm1057_vm4, %v3392_v6  ;;  %2652 = vmatprep.mubr.msk.bf16.mxu1 %vm1057_vm4, %v3392_v6  ;;  %v2901_v8 = vmov 0   ;;  %v1277_v24 = vld [vmem:[#allocation3 + $0x18] sm:$0xff]  ;;  %v1276_v40 = vld [vmem:[#allocation3 + $0x10] sm:$0xff] }
 0x3d4   : > { %2720 = vmatprep.subr.msk.bf16.mxu0 %vm1057_vm4, %v2456_v5  ;;  %2728 = vmatprep.subr.msk.bf16.mxu1 %vm1057_vm4, %v2464_v4  ;;  %v1086_v38 = vsel %vm1057_vm4, %v2448_v62, 0  ;;  %v1134_v53 = vsel %vm1057_vm4, %v2464_v4, 0  ;;  %v2454_v21 = vcombine.low %v3127_v30, %v3132_v31  ;;  %v2462_v39 = vcombine.low %v3207_v47, %v3212_v48  ;;  %v1239_v5 = vld [vmem:[#allocation2 + $0x8] sm:$0xff]  ;;  %v1238_v4 = vld [vmem:[#allocation2] sm:$0xff] }
 0x3d5   : > { %2547 = vmatpush3.bf16.xpose.msra.mxu0 %v1086_v38  ;;  %2637 = vmatpush3.bf16.xpose.msra.mxu1 %v1134_v53  ;;  %v1083_v59 = vsel %vm1057_vm4, %v2447_v61, 0  ;;  %v1131_v22 = vsel %vm1057_vm4, %v2463_v37, 0  ;;  %v2446_v58 = vcombine.low %v3047_v14, %v3052_v15  ;;  %v2453_v7 = vcombine.low %v3117_v28, %v3122_v29  ;;  %v3743_v61 = vld [vmem:[#allocation24_spill] sm:$0xff] }
 0x3d6   : > { %2721 = vmatprep.subr.msk.bf16.mxu0 %vm1057_vm4, %v2455_v20  ;;  %2729 = vmatprep.subr.msk.bf16.mxu1 %vm1057_vm4, %v2463_v37  ;;  %v1128_v42 = vsel %vm1057_vm4, %v2462_v39, 0  ;;  %v2461_v56 = vcombine.low %v3197_v45, %v3202_v46  ;;  %v2445_v60 = vcombine.low %v3037_v12, %v3042_v13  ;;  %v2452_v41 = vcombine.low %v3107_v26, %v3112_v27  ;;  %v1275_v20 = vld [vmem:[#allocation3 + $0x8] sm:$0xff]  ;;  %v1274_v37 = vld [vmem:[#allocation3] sm:$0xff] }
 0x3d7   : > { %2821 = vset.pattern.permute.xlu1 %v2901_v8  ;;  %2820 = vset.pattern.permute.xlu0 %v2901_v8  ;;  %v1080_v23 = vsel %vm1057_vm4, %v2446_v58, 0  ;;  %v2460_v55 = vcombine.low %v3187_v43, %v3192_v44  ;;  %v2444_v62 = vcombine.low %v3027_v10, %v3032_v11  ;;  %v3747_v58 = vld [vmem:[#allocation14_spill] sm:$0xff]  ;;  %vm2903_vm5 = vmmov 0  }
 0x3d8   : > { %1254 = vperm.xlu1 %2821, %v1240_v63   ;;  %919 = vperm.xlu0 %2820, %v2986_v2   ;;  %v1077_v57 = vsel %vm1057_vm4, %v2445_v60, 0  ;;  %v1125_v9 = vsel %vm1057_vm4, %v2461_v56, 0  ;;  %v3746_v63 = vld [vmem:[#allocation15_spill] sm:$0xff]  ;;  %vm1343_vm6 = vcmask 261120   ;;  %vm1455_vm7 = vcmask 7168  }
 0x3d9   : > { %v1074_v38 = vsel %vm1057_vm4, %v2444_v62, 0  ;;  %v1122_v53 = vsel %vm1057_vm4, %v2460_v55, 0  ;;  %v3754_v62 = vld [vmem:[#allocation21_spill] sm:$0xff] }
 0x3dc   : > { %1259 = vperm.xlu1 %2821, %v1241_v36   ;;  %924 = vperm.xlu0 %2820, %v2992_v3   ;;  %v2443_v36 = vcombine.low %v3747_v58, %v3746_v63  ;;  %v2825_v58 = vld [vmem:[%s3674_s1 + $0x8] sm:$0xff]  }
 0x3dd   : > { %2549 = vmatpush3.bf16.xpose.msra.mxu0 %v1083_v59  ;;  %2639 = vmatpush3.bf16.xpose.msra.mxu1 %v1131_v22  ;;  %v2451_v59 = vcombine.low %v3743_v61, %v3102_v25  ;;  %v3744_v22 = vld [vmem:[#allocation35_spill] sm:$0xff] }
 0x3de   : > { %2722 = vmatprep.subr.msk.bf16.mxu0 %vm1057_vm4, %v2454_v21  ;;  %2730 = vmatprep.subr.msk.bf16.mxu1 %vm1057_vm4, %v2462_v39  ;;  %v3745_v21 = vld [vmem:[#allocation34_spill] sm:$0xff] }
 0x3df   : > { %v2459_v39 = vcombine.low %v3745_v21, %v3744_v22  ;;  %v3759_v22 = vld [vmem:[#allocation10_spill] sm:$0xff] }
 0x3e0   : > { %914 = vperm.xlu1 %2821, %v2981_v1   ;;  %909 = vperm.xlu0 %2820, %v2976_v0  }
 0x3e4   : > { %1295 = vperm.xlu1 %2821, %v1277_v24   ;;  %1290 = vperm.xlu0 %2820, %v1276_v40   ;;  %v3750_v24 = vld [vmem:[#allocation33_spill] sm:$0xff]  ;;  %v3751_v40 = vld [vmem:[#allocation32_spill] sm:$0xff] }
 0x3e5   : > { %2551 = vmatpush3.bf16.xpose.msra.mxu0 %v1080_v23  ;;  %2641 = vmatpush3.bf16.xpose.msra.mxu1 %v1128_v42  ;;  %v1071_v23 = vsel %vm1057_vm4, %v2443_v36, 0  ;;  %v1119_v42 = vsel %vm1057_vm4, %v2459_v39, 0  ;;  %v3697_v36 = vmov 0.0  }
 0x3e6   : > { %2723 = vmatprep.subr.msk.bf16.mxu0 %vm1057_vm4, %v2453_v7  ;;  %2731 = vmatprep.subr.msk.bf16.mxu1 %vm1057_vm4, %v2461_v56  ;;  %v3748_v7 = vld [vmem:[#allocation23_spill] sm:$0xff]  ;;  %v3749_v56 = vld [vmem:[#allocation22_spill] sm:$0xff] }
 0x3e7   : > { %v2450_v60 = vcombine.low %v3749_v56, %v3748_v7 }
 0x3e8   : > { %1249 = vperm.xlu1 %2821, %v1239_v5   ;;  %1244 = vperm.xlu0 %2820, %v1238_v4  }
 0x3ec   : > { %1285 = vperm.xlu1 %2821, %v1275_v20   ;;  %1280 = vperm.xlu0 %2820, %v1274_v37   ;;  %v3755_v20 = vld [vmem:[#allocation20_spill] sm:$0xff] }
 0x3ed   : > { %2553 = vmatpush3.bf16.xpose.msra.mxu0 %v1077_v57  ;;  %2643 = vmatpush3.bf16.xpose.msra.mxu1 %v1125_v9  ;;  %v2458_v57 = vcombine.low %v3751_v40, %v3750_v24  ;;  %v3752_v9 = vld [vmem:[#allocation13_spill] sm:$0xff]  ;;  %v2449_v37 = vcombine.low %v3755_v20, %v3754_v62 }
 0x3ee   : > { %2724 = vmatprep.subr.msk.bf16.mxu0 %vm1057_vm4, %v2452_v41  ;;  %2732 = vmatprep.subr.msk.bf16.mxu1 %vm1057_vm4, %v2460_v55  ;;  %v3753_v41 = vld [vmem:[#allocation12_spill] sm:$0xff] }
 0x3ef   : > { %v2442_v55 = vcombine.low %v3753_v41, %v3752_v9  ;;  %v1116_v4 = vsel %vm1057_vm4, %v2458_v57, 0 }
 0x3f1   : > { %v1068_v5 = vsel %vm1057_vm4, %v2442_v55, 0 }
 0x3f5   : > { %2555 = vmatpush3.bf16.xpose.msra.mxu0 %v1074_v38  ;;  %2645 = vmatpush3.bf16.xpose.msra.mxu1 %v1122_v53  ;;  %v3756_v38 = vld [vmem:[#allocation31_spill] sm:$0xff]  ;;  %v3757_v53 = vld [vmem:[#allocation30_spill] sm:$0xff] }
 0x3f6   : > { %2725 = vmatprep.subr.msk.bf16.mxu0 %vm1057_vm4, %v2451_v59  ;;  %2733 = vmatprep.subr.msk.bf16.mxu1 %vm1057_vm4, %v2459_v39  ;;  %v2457_v61 = vcombine.low %v3757_v53, %v3756_v38  ;;  %v3758_v59 = vld [vmem:[#allocation11_spill] sm:$0xff] }
 0x3f7   : > { %v2441_v21 = vcombine.low %v3759_v22, %v3758_v59 }
 0x3f8   : > { %v1113_v63 = vsel %vm1057_vm4, %v2457_v61, 0 }
 0x3f9   : > { %v1065_v39 = vsel %vm1057_vm4, %v2441_v21, 0 }
 0x3fd   : > { %2557 = vmatpush3.bf16.xpose.msra.mxu0 %v1071_v23  ;;  %2647 = vmatpush3.bf16.xpose.msra.mxu1 %v1119_v42  ;;  %v2904_v23 = vmov 1  }
 0x3fe   : > { %2726 = vmatprep.subr.msk.bf16.mxu0 %vm1057_vm4, %v2450_v60  ;;  %2734 = vmatprep.subr.msk.bf16.mxu1 %vm1057_vm4, %v2458_v57 }
 0x3ff   : > { %2822 = vset.pattern.permute.xlu0 %v2904_v23  ;;  %2823 = vset.pattern.permute.xlu1 %v2904_v23 }
 0x400   : > { %1331 = vperm.xlu0 %2822, %v2976_v0   ;;  %1335 = vperm.xlu1 %2823, %v2981_v1  }
 0x405   : > { %2559 = vmatpush3.bf16.xpose.msra.mxu0 %v1068_v5  ;;  %2649 = vmatpush3.bf16.xpose.msra.mxu1 %v1116_v4 }
 0x406   : > { %2727 = vmatprep.subr.msk.bf16.mxu0 %vm1057_vm4, %v2449_v37  ;;  %2735 = vmatprep.subr.msk.bf16.mxu1 %vm1057_vm4, %v2457_v61 }
 0x40d   : > { %2561 = vmatpush3.bf16.xpose.msra.mxu0 %v1065_v39  ;;  %2651 = vmatpush3.bf16.xpose.msra.mxu1 %v1113_v63 }
 0x40e   : > { %2656 = vmatprep.subr.bf16.mxu0 %v3697_v36 }
 0x414   : > { %2563 = vmatmul.mubr.msk.bf16.vlgmr.msra.gmra.mxu0 %vm1057_vm4, %v3392_v6  ;;  %2653 = vmatmul.mubr.msk.bf16.vlgmr.msra.gmra.mxu1 %vm1057_vm4, %v2825_v58 }
 0x415   : > { %2564 = vmatprep.mubr.msk.bf16.mxu0 %vm1057_vm4, %v2825_v58  ;;  %1379 = vmatprep.mubr.bf16.mxu1 %v2901_v8 }
 0x41c   : > { %2565 = vmatmul.mubr.msk.bf16.gmra.mxu0 %vm1057_vm4, %v2825_v58 }
 0x41d   : > { %2660 = vmatprep.mubr.msk.bf16.mxu0 %vm2903_vm5, %v3697_v36 }
 0x453   : > { %v1255_v6 = vpop.permute.xlu1 %1254  ;;  %v920_v42 = vpop.permute.xlu0 %919 }
 0x457   : > { %v1260_v7 = vpop.permute.xlu1 %1259  ;;  %v925_v56 = vpop.permute.xlu0 %924 }
 0x45b   : > { %v915_v8 = vpop.permute.xlu1 %914  ;;  %v910_v60 = vpop.permute.xlu0 %909 }
 0x45f   : > { %v1296_v24 = vpop.permute.xlu1 %1295  ;;  %v1291_v40 = vpop.permute.xlu0 %1290 }
 0x463   : > { %v1250_v38 = vpop.permute.xlu1 %1249  ;;  %v1245_v53 = vpop.permute.xlu0 %1244 }
 0x467   : > { %v1286_v43 = vpop.permute.xlu1 %1285 }
 0x4d4   : > { %v1170_v57 = vpop.f32.mrf.mxu0  ;;  %v2654_v9 = vpop.f32.mrf.mxu1 }
 0x4d5   : > { %v1232_v41 = vadd.f32 %v2654_v9, %v920_v42 }
 0x4d6   : > { %v1172_v55 = vpop.f32.mrf.mxu0  ;;  %v1223_v5 = vpop.f32.mrf.mxu1 }
 0x4d7   : > { %v1270_v4 = vmul.f32 %v1255_v6, %v1232_v41  ;;  %v1224_v62 = vadd.f32 %v1223_v5, %v910_v60  ;;  %v1281_v41 = vpop.permute.xlu0 %1280  ;;  %v1173_v5 = vadd.f32 %v1172_v55, %v910_v60 }
 0x4d8   : > { %v1174_v20 = vpop.f32.mrf.mxu0  ;;  %v2655_v37 = vpop.f32.mrf.mxu1 }
 0x4d9   : > { %v1235_v61 = vadd.f32 %v2655_v37, %v925_v56  ;;  %v1306_v21 = vadd.f32 %v1291_v40, %v1270_v4  ;;  %v1264_v39 = vmul.f32 %v1245_v53, %v1224_v62  ;;  %v1175_v44 = vadd.f32 %v1174_v20, %v915_v8 }
 0x4da   : > { %v1176_v59 = vpop.f32.mrf.mxu0  ;;  %v1226_v22 = vpop.f32.mrf.mxu1 }
 0x4db   : > { %v1273_v63 = vmul.f32 %v1260_v7, %v1235_v61  ;;  %v1227_v58 = vadd.f32 %v1226_v22, %v915_v8  ;;  %v1177_v36 = vadd.f32 %v1176_v59, %v915_v8  ;;  %v1318_v27 = vmax.f32 %v1306_v21, 0.0 }
 0x4dc   : > { %v1180_v23 = vpop.f32.mrf.mxu0  ;;  %v1300_v12 = vadd.f32 %v1281_v41, %v1264_v39  ;;  %v1171_v22 = vadd.f32 %v1170_v57, %v910_v60  ;;  %v1265_v55 = vmul.f32 %v1250_v38, %v1175_v44 }
 0x4dd   : > { %v1309_v25 = vadd.f32 %v1296_v24, %v1273_v63  ;;  %v1267_v10 = vmul.f32 %v1250_v38, %v1227_v58  ;;  %v1181_v9 = vadd.f32 %v1180_v23, %v920_v42  ;;  %v1266_v4 = vmul.f32 %v1250_v38, %v1177_v36 }
 0x4de   : > { %v1182_v11 = vpop.f32.mrf.mxu0  ;;  %v1263_v23 = vmul.f32 %v1245_v53, %v1173_v5  ;;  %v1312_v29 = vmax.f32 %v1300_v12, 0.0  ;;  %v1262_v36 = vmul.f32 %v1245_v53, %v1171_v22 }
 0x4df   : > { %v1183_v26 = vadd.f32 %v1182_v11, %v920_v42  ;;  %v1321_v37 = vmax.f32 %v1309_v25, 0.0  ;;  %v1303_v13 = vadd.f32 %v1286_v43, %v1267_v10  ;;  %v1268_v63 = vmul.f32 %v1255_v6, %v1181_v9  ;;  %v1332_v9 = vpop.permute.xlu0 %1331 }
 0x4e0   : > { %v1184_v3 = vpop.f32.mrf.mxu0  ;;  %v1302_v11 = vadd.f32 %v1286_v43, %v1266_v4  ;;  %v3760_v10 = vmov 0.0   ;;  %v1299_v60 = vadd.f32 %v1281_v41, %v1263_v23 }
 0x4e1   : > { %v1269_v62 = vmul.f32 %v1255_v6, %v1183_v26  ;;  %v1185_v61 = vadd.f32 %v1184_v3, %v925_v56  ;;  %v1329_v45 = vpack.c.bf16 %v1321_v37, %v1318_v27  ;;  %v1315_v59 = vmax.f32 %v1303_v13, 0.0  ;;  %v2826_v13 = vld [vmem:[%s3675_s2] sm:$0xff]   ;;  %v1336_v37 = vpop.permute.xlu1 %1335 }
 0x4e2   : > { %v1186_v58 = vpop.f32.mrf.mxu0  ;;  %v1304_v3 = vadd.f32 %v1291_v40, %v1268_v63  ;;  %v1301_v6 = vadd.f32 %v1286_v43, %v1265_v55  ;;  %v1314_v12 = vmax.f32 %v1302_v11, 0.0 }
 0x4e3   : > { %v1271_v46 = vmul.f32 %v1260_v7, %v1185_v61  ;;  %v1187_v28 = vadd.f32 %v1186_v58, %v925_v56  ;;  %2657 = vmatpush3.bf16.msra.mxu0 %v1329_v45  ;;  %v1305_v42 = vadd.f32 %v1291_v40, %v1269_v62  ;;  %v1326_v26 = vpack.c.bf16 %v1315_v59, %v1312_v29 }
 0x4e4   : > { %2658 = vmatprep.subr.bf16.mxu0 %v3760_v10  ;;  %v1313_v29 = vmax.f32 %v1301_v6, 0.0 }
 0x4e5   : > { %v1307_v8 = vadd.f32 %v1296_v24, %v1271_v46  ;;  %v1272_v25 = vmul.f32 %v1260_v7, %v1187_v28  ;;  %v1317_v44 = vmax.f32 %v1305_v42, 0.0  ;;  %v1298_v46 = vadd.f32 %v1281_v41, %v1262_v36 }
 0x4e6   : > { %v1316_v28 = vmax.f32 %v1304_v3, 0.0  ;;  %v1311_v7 = vmax.f32 %v1299_v60, 0.0 }
 0x4e7   : > { %v1308_v27 = vadd.f32 %v1296_v24, %v1272_v25  ;;  %v1319_v56 = vmax.f32 %v1307_v8, 0.0  ;;  %2659 = vmatpush3.bf16.msra.mxu0 %v1326_v26  ;;  %v1310_v20 = vmax.f32 %v1298_v46, 0.0 }
 0x4e8   : > { %v1325_v24 = vpack.c.bf16 %v1314_v12, %v1311_v7 }
 0x4e9   : > { %v1320_v45 = vmax.f32 %v1308_v27, 0.0  ;;  %v1327_v40 = vpack.c.bf16 %v1319_v56, %v1316_v28  ;;  %v1324_v43 = vpack.c.bf16 %v1313_v29, %v1310_v20  ;;  %v1444_v28 = vld [vmem:[#allocation4 + $0x8] sm:$0xff] }
 0x4ea   : > { %2661 = vmatmul.mubr.msk.bf16.vlgmr.msra.gmra.mxu0 %vm1343_vm6, %v2826_v13 }
 0x4eb   : > { %v1328_v57 = vpack.c.bf16 %v1320_v45, %v1317_v44  ;;  %v1443_v45 = vld [vmem:[#allocation4] sm:$0xff] }
 0x4ed   : > { %1359 = vmatprep.subr.bf16.mxu1 %v1328_v57  ;;  %v1459_v57 = vld [vmem:[#allocation5 + $0x8] sm:$0xff] }
 0x4ee   : > { %1360 = vmatpush1.bf16.msra.mxu1 %v1327_v40 }
 0x4ef   : > { %1361 = vmatprep.subr.bf16.mxu1 %v1325_v24  ;;  %v1458_v24 = vld [vmem:[#allocation5] sm:$0xff] }
 0x4f2   : > { %1362 = vmatpush1.bf16.msra.mxu1 %v1324_v43 }
 0x4f5   : > { %2470 = vmatmul.mubr.msk.bf16.vlgmr.msra.gmra.mxu1 %vm1343_vm6, %v2826_v13 }
 0x5aa   : > { %v1424_v38 = vpop.f32.mrf.mxu0 }
 0x5ab   : > { %v1425_v5 = vadd.f32 %v1424_v38, %v1332_v9 }
 0x5ac   : > { %v2662_v53 = vpop.f32.mrf.mxu0 }
 0x5ad   : > { %v1439_v59 = vsel %vm335_vm0, %v1425_v5, 0.0 }
 0x5ae   : > { %v1427_v21 = vpop.f32.mrf.mxu0  ;;  %v1462_v60 = vmul.f32 %v1439_v59, %v1439_v59 }
 0x5af   : > { %v1428_v63 = vadd.f32 %v1427_v21, %v1336_v37 }
 0x5b0   : > { %v2663_v39 = vpop.f32.mrf.mxu0 }
 0x5b1   : > { %v1442_v25 = vsel %vm335_vm0, %v1428_v63, 0.0 }
 0x5b2   : > { %v1465_v13 = vmul.f32 %v1442_v25, %v1442_v25 }
 0x5b5   : > { %v1381_v41 = vpop.f32.mrf.mxu1 }
 0x5b6   : > { %v1382_v62 = vadd.f32 %v1381_v41, %v1332_v9 }
 0x5b7   : > { %v1383_v4 = vpop.f32.mrf.mxu1 }
 0x5b8   : > { %v1384_v61 = vadd.f32 %v1383_v4, %v1332_v9  ;;  %v1460_v3 = vmul.f32 %v1382_v62, %v1382_v62 }
 0x5b9   : > { %v1385_v22 = vpop.f32.mrf.mxu1 }
 0x5ba   : > { %v1445_v58 = vadd.f32 %v1384_v61, %v1382_v62  ;;  %v1386_v23 = vadd.f32 %v1385_v22, %v1336_v37  ;;  %v1461_v11 = vmul.f32 %v1384_v61, %v1384_v61 }
 0x5bb   : > { %v1387_v55 = vpop.f32.mrf.mxu1 }
 0x5bc   : > { %v1388_v42 = vadd.f32 %v1387_v55, %v1336_v37  ;;  %v1446_v8 = vadd.f32 %v1445_v58, %v1439_v59  ;;  %v1463_v10 = vmul.f32 %v1386_v23, %v1386_v23  ;;  %v1466_v56 = vadd.f32 %v1461_v11, %v1460_v3 }
 0x5be   : > { %v1449_v36 = vadd.f32 %v1388_v42, %v1386_v23  ;;  %v1464_v26 = vmul.f32 %v1388_v42, %v1388_v42  ;;  %1447 = vadd.xlane.f32.xlu1 %v1446_v8  ;;  %v1467_v44 = vadd.f32 %v1466_v56, %v1462_v60 }
 0x5c0   : > { %v1450_v27 = vadd.f32 %v1449_v36, %v1442_v25  ;;  %v1470_v6 = vadd.f32 %v1464_v26, %v1463_v10 }
 0x5c2   : > { %1451 = vadd.xlane.f32.xlu0 %v1450_v27  ;;  %v1471_v12 = vadd.f32 %v1470_v6, %v1465_v13 }
 0x5c4   : > { %1472 = vadd.xlane.f32.xlu1 %v1471_v12 }
 0x5c6   : > { %1468 = vadd.xlane.f32.xlu0 %v1467_v44 }
 0x647   : > { %v1448_v46 = vpop.xlane.xlu1 %1447 }
 0x648   : > { %v1453_v54 = vadd.f32 %v1448_v46, %v1443_v45 }
 0x64a   : > { %1456 = vst.msk [vmem:[#allocation4] sm:$0xff] %vm1455_vm7, %v1453_v54 }
 0x64b   : > { %v1452_v7 = vpop.xlane.xlu0 %1451 }
 0x64c   : > { %v1454_v29 = vadd.f32 %v1452_v7, %v1444_v28 }
 0x64d   : > { %v1473_v40 = vpop.xlane.xlu1 %1472 }
 0x64e   : > { %1457 = vst.msk [vmem:[#allocation4 + $0x8] sm:$0xff] %vm1455_vm7, %v1454_v29  ;;  %v1475_v20 = vadd.f32 %v1473_v40, %v1459_v57 }
 0x64f   : > { %v1469_v43 = vpop.xlane.xlu0 %1468 }
 0x650   : > { %1477 = vst.msk [vmem:[#allocation5 + $0x8] sm:$0xff] %vm1455_vm7, %v1475_v20  ;;  %v1474_v38 = vadd.f32 %v1469_v43, %v1458_v24 }
 0x651   : > { %v1481_v53 = vld [vmem:[#allocation4] sm:$0xff] }
 0x652   : > { %1476 = vst.msk [vmem:[#allocation5] sm:$0xff] %vm1455_vm7, %v1474_v38  ;;  %v1483_v9 = vmul.f32 0.0033333334, %v1481_v53 }
 0x654   : > { %v1489_v22 = vmul.f32 %v1483_v9, %v1483_v9 }
 0x655   : > { %v1482_v21 = vld [vmem:[#allocation4 + $0x8] sm:$0xff] }
 0x656   : > { %v1484_v39 = vmul.f32 0.0033333334, %v1482_v21 }
 0x657   : > { %v1486_v41 = vld [vmem:[#allocation5 + $0x8] sm:$0xff] }
 0x658   : > { %v1488_v5 = vmul.f32 0.0033333334, %v1486_v41  ;;  %v1490_v37 = vmul.f32 %v1484_v39, %v1484_v39 }
 0x659   : > { %v1485_v4 = vld [vmem:[#allocation5] sm:$0xff] }
 0x65a   : > { %v1492_v62 = vsub.f32 %v1488_v5, %v1490_v37  ;;  %v1487_v61 = vmul.f32 0.0033333334, %v1485_v4 }
 0x65c   : > { %v1494_v59 = vadd.f32 1e-05, %v1492_v62  ;;  %v1491_v63 = vsub.f32 %v1487_v61, %v1489_v22 }
 0x65e   : > { %2827 = vrsqrt.f32 %v1494_v59  ;;  %v1493_v58 = vadd.f32 1e-05, %v1491_v63 }
 0x660   : > { %2829 = vrsqrt.f32 %v1493_v58 }
 0x66b   : > { %v2828_v23 = vpop.eup %2827 }
 0x66c   : > { %1501 = vrot.lane.b32.xlu1 %v2828_v23, %s2905_s13 }
 0x66d   : > { %v2830_v55 = vpop.eup %2829 }
 0x66e   : > { %1499 = vrot.lane.b32.xlu0 %v2830_v55, %s2905_s13 }
 0x6de   : > { %v1502_v11 = vpop.permute.xlu1 %1501 }
 0x6df   : > { %v1506_v42 = vmul.f32 %v1502_v11, %v2981_v1 }
 0x6e0   : > { %v1500_v8 = vpop.permute.xlu0 %1499 }
 0x6e1   : > { %v1505_v25 = vmul.f32 %v1500_v8, %v2976_v0  ;;  %1511 = vrot.lane.b32.xlu0 %v1506_v42, %s2906_s14 }
 0x6e3   : > { %1509 = vrot.lane.b32.xlu1 %v1505_v25, %s2906_s14 }
 0x753   : > { %v1512_v10 = vpop.permute.xlu0 %1511 }
 0x754   : > { %v1516_v36 = vmul.f32 %v1512_v10, %v1484_v39  ;;  %1528 = vst.msk [vmem:[#allocation4 + $0x8] sm:$0xff] %vm1455_vm7, %v1512_v10 }
 0x755   : > { %v1510_v26 = vpop.permute.xlu1 %1509 }
 0x756   : > { %v1515_v3 = vmul.f32 %v1510_v26, %v1483_v9  ;;  %1527 = vst.msk [vmem:[#allocation4] sm:$0xff] %vm1455_vm7, %v1510_v26  ;;  %1521 = vrot.lane.b32.xlu0 %v1516_v36, %s2907_s15 }
 0x758   : > { %1519 = vrot.lane.b32.xlu1 %v1515_v3, %s2907_s15 }
 0x7c8   : > { %v1522_v60 = vpop.permute.xlu0 %1521 }
 0x7c9   : > { %v1526_v27 = vsub.f32 %v2981_v1, %v1522_v60 }
 0x7ca   : > { %v1520_v13 = vpop.permute.xlu1 %1519 }
 0x7cb   : > { %v1525_v6 = vsub.f32 %v2976_v0, %v1520_v13  ;;  %1533 = vrot.lane.b32.xlu0 %v1526_v27, %s2908_s16 }
 0x7cd   : > { %1531 = vrot.lane.b32.xlu1 %v1525_v6, %s2908_s16 }
 0x83d   : > { %v1534_v56 = vpop.permute.xlu0 %1533 }
 0x83e   : > { %1538 = vst.msk [vmem:[#allocation5 + $0x8] sm:$0xff] %vm1455_vm7, %v1534_v56 }
 0x83f   : > { %v1532_v12 = vpop.permute.xlu1 %1531 }
 0x840   : > { %1537 = vst.msk [vmem:[#allocation5] sm:$0xff] %vm1455_vm7, %v1532_v12 }
 0x841 PF: > { %p2472_p7 = scmp.ne.s32.totalorder %s2885_s21, 2 }
 0x843   : > { %1542 = sbr.rel (%p2472_p7) target bundleno = 3028 (0xbd4), region = 68 }
 0x848   : > { %v2490_v44 = vcombine.low %v3147_v34, %v3152_v35  ;;  %vm1697_vm8 = vcmask 130048   ;;  %v2498_v45 = vcombine.low %v3227_v51, %v3232_v52  ;;  %v2482_v46 = vcombine.low %v3067_v18, %v3072_v19  ;;  %v3523_v7 = vld [vmem:[%s3674_s1] sm:$0xff]   ;;  %v3762_v51 = vld [vmem:[#allocation28_spill] sm:$0xff]  ;;  %v3764_v29 = vld [vmem:[#allocation38_spill] sm:$0xff] }
 0x849   : > { %v2489_v54 = vcombine.low %v3137_v32, %v3142_v33  ;;  %v2497_v28 = vcombine.low %v3217_v49, %v3222_v50  ;;  %v2481_v18 = vcombine.low %v3057_v16, %v3062_v17  ;;  %2595 = vmatprep.mubr.msk.bf16.mxu0 %vm1697_vm8, %v3523_v7  ;;  %2680 = vmatprep.mubr.msk.bf16.mxu1 %vm1697_vm8, %v3523_v7  ;;  %v2909_v50 = vmov 0   ;;  %v1880_v16 = vld [vmem:[#allocation2 + $0x10] sm:$0xff]  ;;  %v3763_v57 = vld [vmem:[#allocation39_spill] sm:$0xff]  ;;  %v1917_v20 = vld [vmem:[#allocation3 + $0x18] sm:$0xff] }
 0x84a   : > { %2736 = vmatprep.subr.msk.bf16.mxu0 %vm1697_vm8, %v2490_v44  ;;  %2744 = vmatprep.subr.msk.bf16.mxu1 %vm1697_vm8, %v2498_v45  ;;  %v1726_v34 = vsel %vm1697_vm8, %v2482_v46, 0  ;;  %v1774_v35 = vsel %vm1697_vm8, %v2498_v45, 0  ;;  %v2488_v33 = vcombine.low %v3127_v30, %v3132_v31  ;;  %v2496_v49 = vcombine.low %v3207_v47, %v3212_v48  ;;  %v1881_v30 = vld [vmem:[#allocation2 + $0x18] sm:$0xff]  ;;  %v3761_v48 = vld [vmem:[#allocation29_spill] sm:$0xff]  ;;  %v3768_v21 = vld [vmem:[#allocation27_spill] sm:$0xff] }
 0x84b   : > { %2580 = vmatpush3.bf16.xpose.msra.mxu0 %v1726_v34  ;;  %2665 = vmatpush3.bf16.xpose.msra.mxu1 %v1774_v35  ;;  %v1723_v19 = vsel %vm1697_vm8, %v2481_v18, 0  ;;  %v1771_v32 = vsel %vm1697_vm8, %v2497_v28, 0  ;;  %v2480_v17 = vcombine.low %v3047_v14, %v3052_v15  ;;  %v2487_v52 = vcombine.low %v3762_v51, %v3761_v48  ;;  %v3765_v24 = vld [vmem:[#allocation9_spill] sm:$0xff]  ;;  %v3767_v14 = vld [vmem:[#allocation18_spill] sm:$0xff]  ;;  %v3771_v5 = vld [vmem:[#allocation36_spill] sm:$0xff] }
 0x84c   : > { %2737 = vmatprep.subr.msk.bf16.mxu0 %vm1697_vm8, %v2489_v54  ;;  %2745 = vmatprep.subr.msk.bf16.mxu1 %vm1697_vm8, %v2497_v28  ;;  %v1768_v47 = vsel %vm1697_vm8, %v2496_v49, 0  ;;  %v2495_v40 = vcombine.low %v3764_v29, %v3763_v57  ;;  %v1916_v43 = vld [vmem:[#allocation3 + $0x10] sm:$0xff]  ;;  %v3769_v39 = vld [vmem:[#allocation26_spill] sm:$0xff]  ;;  %v1879_v4 = vld [vmem:[#allocation2 + $0x8] sm:$0xff]  ;;  %v2910_v57 = vmov 0.0   ;;  %vm2911_vm9 = vmmov 0  }
 0x84d   : > { %2832 = vset.pattern.permute.xlu1 %v2909_v50  ;;  %2831 = vset.pattern.permute.xlu0 %v2909_v50  ;;  %v1720_v31 = vsel %vm1697_vm8, %v2480_v17, 0  ;;  %v2486_v9 = vcombine.low %v3769_v39, %v3768_v21  ;;  %v3770_v41 = vld [vmem:[#allocation37_spill] sm:$0xff]  ;;  %v1878_v62 = vld [vmem:[#allocation2] sm:$0xff]  ;;  %v3773_v22 = vld [vmem:[#allocation16_spill] sm:$0xff]  ;;  %v2912_v29 = vmov 1   ;;  %vm1983_vm10 = vcmask 261120  }
 0x84e   : > { %1894 = vperm.xlu1 %2832, %v1880_v16   ;;  %1559 = vperm.xlu0 %2831, %v2986_v2   ;;  %v3766_v2 = vld [vmem:[#allocation19_spill] sm:$0xff]  ;;  %v1765_v53 = vsel %vm1697_vm8, %v2495_v40, 0  ;;  %v2494_v37 = vcombine.low %v3771_v5, %v3770_v41  ;;  %v3772_v61 = vld [vmem:[#allocation17_spill] sm:$0xff]  ;;  %v1915_v63 = vld [vmem:[#allocation3 + $0x8] sm:$0xff]  ;;  %vm2220_vm11 = vcmask 1043456   ;;  %vm2216_vm12 = vcmask 64512  }
 0x84f   : > { %v2479_v15 = vcombine.low %v3767_v14, %v3766_v2  ;;  %v2478_v59 = vcombine.low %v3773_v22, %v3772_v61  ;;  %v1914_v58 = vld [vmem:[#allocation3] sm:$0xff]  ;;  %v3774_v11 = vld [vmem:[#allocation25_spill] sm:$0xff]  ;;  %v3775_v42 = vld [vmem:[#allocation24_spill] sm:$0xff] }
 0x850   : > { %v1762_v55 = vsel %vm1697_vm8, %v2494_v37, 0  ;;  %v2485_v8 = vcombine.low %v3775_v42, %v3774_v11  ;;  %v3776_v25 = vld [vmem:[#allocation35_spill] sm:$0xff]  ;;  %v3777_v10 = vld [vmem:[#allocation34_spill] sm:$0xff]  ;;  %v3782_v44 = vld [vmem:[#allocation33_spill] sm:$0xff] }
 0x851   : > { %v1717_v38 = vsel %vm1697_vm8, %v2479_v15, 0  ;;  %v1714_v23 = vsel %vm1697_vm8, %v2478_v59, 0  ;;  %v2493_v36 = vcombine.low %v3777_v10, %v3776_v25  ;;  %v3778_v26 = vld [vmem:[#allocation15_spill] sm:$0xff]  ;;  %v3779_v3 = vld [vmem:[#allocation14_spill] sm:$0xff]  ;;  %v3783_v45 = vld [vmem:[#allocation32_spill] sm:$0xff] }
 0x852   : > { %1899 = vperm.xlu1 %2832, %v1881_v30   ;;  %1564 = vperm.xlu0 %2831, %v3765_v24   ;;  %v2477_v60 = vcombine.low %v3779_v3, %v3778_v26  ;;  %v3780_v6 = vld [vmem:[#allocation23_spill] sm:$0xff]  ;;  %v3781_v56 = vld [vmem:[#allocation22_spill] sm:$0xff]  ;;  %v2492_v46 = vcombine.low %v3783_v45, %v3782_v44  ;;  %v3784_v54 = vld [vmem:[#allocation13_spill] sm:$0xff] }
 0x853   : > { %2582 = vmatpush3.bf16.xpose.msra.mxu0 %v1723_v19  ;;  %2667 = vmatpush3.bf16.xpose.msra.mxu1 %v1771_v32  ;;  %v1759_v13 = vsel %vm1697_vm8, %v2493_v36, 0  ;;  %v2484_v12 = vcombine.low %v3781_v56, %v3780_v6  ;;  %v3785_v28 = vld [vmem:[#allocation12_spill] sm:$0xff]  ;;  %v3786_v19 = vld [vmem:[#allocation21_spill] sm:$0xff]  ;;  %v3789_v16 = vld [vmem:[#allocation30_spill] sm:$0xff] }
 0x854   : > { %2738 = vmatprep.subr.msk.bf16.mxu0 %vm1697_vm8, %v2488_v33  ;;  %2746 = vmatprep.subr.msk.bf16.mxu1 %vm1697_vm8, %v2496_v49  ;;  %v1711_v27 = vsel %vm1697_vm8, %v2477_v60, 0  ;;  %v2476_v34 = vcombine.low %v3785_v28, %v3784_v54  ;;  %v1756_v18 = vsel %vm1697_vm8, %v2492_v46, 0  ;;  %v3787_v32 = vld [vmem:[#allocation20_spill] sm:$0xff]  ;;  %v3788_v49 = vld [vmem:[#allocation31_spill] sm:$0xff]  ;;  %v2089_v24 = vld [vmem:[#allocation5] sm:$0xff] }
 0x855   : > { %v2483_v33 = vcombine.low %v3787_v32, %v3786_v19  ;;  %v2491_v17 = vcombine.low %v3789_v16, %v3788_v49  ;;  %v3790_v30 = vld [vmem:[#allocation11_spill] sm:$0xff]  ;;  %v2090_v2 = vld [vmem:[#allocation5 + $0x8] sm:$0xff] }
 0x856   : > { %1554 = vperm.xlu1 %2832, %v2981_v1   ;;  %1549 = vperm.xlu0 %2831, %v2976_v0   ;;  %v1708_v35 = vsel %vm1697_vm8, %v2476_v34, 0 }
 0x857   : > { %v1753_v51 = vsel %vm1697_vm8, %v2491_v17, 0 }
 0x85a   : > { %1935 = vperm.xlu1 %2832, %v1917_v20   ;;  %1930 = vperm.xlu0 %2831, %v1916_v43  }
 0x85b   : > { %2584 = vmatpush3.bf16.xpose.msra.mxu0 %v1720_v31  ;;  %2669 = vmatpush3.bf16.xpose.msra.mxu1 %v1768_v47  ;;  %v3791_v31 = vld [vmem:[#allocation10_spill] sm:$0xff] }
 0x85c   : > { %2739 = vmatprep.subr.msk.bf16.mxu0 %vm1697_vm8, %v2487_v52  ;;  %2747 = vmatprep.subr.msk.bf16.mxu1 %vm1697_vm8, %v2495_v40  ;;  %v2475_v47 = vcombine.low %v3791_v31, %v3790_v30  ;;  %v2841_v52 = vld [vmem:[%s3674_s1 + $0x8] sm:$0xff]  }
 0x85d   : > { %v2072_v40 = vld [vmem:[#allocation4 + $0x8] sm:$0xff] }
 0x85e   : > { %1889 = vperm.xlu1 %2832, %v1879_v4   ;;  %1884 = vperm.xlu0 %2831, %v1878_v62   ;;  %v1705_v48 = vsel %vm1697_vm8, %v2475_v47, 0 }
 0x862   : > { %1925 = vperm.xlu1 %2832, %v1915_v63   ;;  %1920 = vperm.xlu0 %2831, %v1914_v58  }
 0x863   : > { %2586 = vmatpush3.bf16.xpose.msra.mxu0 %v1717_v38  ;;  %2671 = vmatpush3.bf16.xpose.msra.mxu1 %v1765_v53 }
 0x864   : > { %2740 = vmatprep.subr.msk.bf16.mxu0 %vm1697_vm8, %v2486_v9  ;;  %2748 = vmatprep.subr.msk.bf16.mxu1 %vm1697_vm8, %v2494_v37 }
 0x866   : > { %2834 = vset.pattern.permute.xlu1 %v2912_v29  ;;  %2833 = vset.pattern.permute.xlu0 %v2912_v29 }
 0x867   : > { %1975 = vperm.xlu1 %2834, %v2981_v1   ;;  %1971 = vperm.xlu0 %2833, %v2976_v0  }
 0x86b   : > { %2588 = vmatpush3.bf16.xpose.msra.mxu0 %v1714_v23  ;;  %2673 = vmatpush3.bf16.xpose.msra.mxu1 %v1762_v55 }
 0x86c   : > { %2741 = vmatprep.subr.msk.bf16.mxu0 %vm1697_vm8, %v2485_v8  ;;  %2749 = vmatprep.subr.msk.bf16.mxu1 %vm1697_vm8, %v2493_v36 }
 0x86d   : > { %2835 = vset.pattern.permute.xlu1 %v2909_v50  ;;  %2836 = vset.pattern.permute.xlu0 %v2909_v50 }
 0x86e   : > { %2080 = vperm.xlu0 %2836, %v2072_v40  }
 0x873   : > { %2590 = vmatpush3.bf16.xpose.msra.mxu0 %v1711_v27  ;;  %2675 = vmatpush3.bf16.xpose.msra.mxu1 %v1759_v13 }
 0x874   : > { %2742 = vmatprep.subr.msk.bf16.mxu0 %vm1697_vm8, %v2484_v12  ;;  %2750 = vmatprep.subr.msk.bf16.mxu1 %vm1697_vm8, %v2492_v46 }
 0x87b   : > { %2592 = vmatpush3.bf16.xpose.msra.mxu0 %v1708_v35  ;;  %2677 = vmatpush3.bf16.xpose.msra.mxu1 %v1756_v18 }
 0x87c   : > { %2743 = vmatprep.subr.msk.bf16.mxu0 %vm1697_vm8, %v2483_v33  ;;  %2751 = vmatprep.subr.msk.bf16.mxu1 %vm1697_vm8, %v2491_v17 }
 0x883   : > { %2594 = vmatpush3.bf16.xpose.msra.mxu0 %v1705_v48  ;;  %2679 = vmatpush3.bf16.xpose.msra.mxu1 %v1753_v51 }
 0x884   : > { %2684 = vmatprep.subr.bf16.mxu0 %v2910_v57 }
 0x88a   : > { %2596 = vmatmul.mubr.msk.bf16.vlgmr.msra.gmra.mxu0 %vm1697_vm8, %v3523_v7  ;;  %2681 = vmatmul.mubr.msk.bf16.vlgmr.msra.gmra.mxu1 %vm1697_vm8, %v2841_v52  ;;  %v2071_v7 = vld [vmem:[#allocation4] sm:$0xff] }
 0x88b   : > { %2597 = vmatprep.mubr.msk.bf16.mxu0 %vm1697_vm8, %v2841_v52  ;;  %2019 = vmatprep.mubr.bf16.mxu1 %v2909_v50 }
 0x88c   : > { %2075 = vperm.xlu1 %2835, %v2071_v7  }
 0x890   : > { %2093 = vperm.xlu1 %2835, %v2089_v24  }
 0x892   : > { %2598 = vmatmul.mubr.msk.bf16.gmra.mxu0 %vm1697_vm8, %v2841_v52 }
 0x893   : > { %2688 = vmatprep.mubr.msk.bf16.mxu0 %vm2911_vm9, %v2910_v57 }
 0x894   : > { %2098 = vperm.xlu1 %2835, %v2090_v2  }
 0x8c9   : > { %v1895_v14 = vpop.permute.xlu1 %1894  ;;  %v1560_v15 = vpop.permute.xlu0 %1559 }
 0x8cd   : > { %v1900_v20 = vpop.permute.xlu1 %1899  ;;  %v1565_v43 = vpop.permute.xlu0 %1564 }
 0x8d1   : > { %v1555_v38 = vpop.permute.xlu1 %1554  ;;  %v1550_v1 = vpop.permute.xlu0 %1549 }
 0x8d5   : > { %v1936_v53 = vpop.permute.xlu1 %1935  ;;  %v1931_v21 = vpop.permute.xlu0 %1930 }
 0x8d9   : > { %v1890_v59 = vpop.permute.xlu1 %1889  ;;  %v1885_v63 = vpop.permute.xlu0 %1884 }
 0x8dd   : > { %v1926_v13 = vpop.permute.xlu1 %1925  ;;  %v1921_v6 = vpop.permute.xlu0 %1920 }
 0x94a   : > { %v1810_v39 = vpop.f32.mrf.mxu0  ;;  %v2682_v9 = vpop.f32.mrf.mxu1 }
 0x94b   : > { %v1872_v41 = vadd.f32 %v2682_v9, %v1560_v15  ;;  %v1811_v32 = vadd.f32 %v1810_v39, %v1550_v1 }
 0x94c   : > { %v1812_v5 = vpop.f32.mrf.mxu0  ;;  %v1863_v37 = vpop.f32.mrf.mxu1 }
 0x94d   : > { %v1910_v4 = vmul.f32 %v1895_v14, %v1872_v41  ;;  %v1864_v62 = vadd.f32 %v1863_v37, %v1550_v1  ;;  %v1813_v56 = vadd.f32 %v1812_v5, %v1550_v1  ;;  %v1902_v24 = vmul.f32 %v1885_v63, %v1811_v32  ;;  %v2113_v32 = vld [vmem:[%s3676_s3] sm:$0xf] }
 0x94e   : > { %v1814_v61 = vpop.f32.mrf.mxu0  ;;  %v2683_v22 = vpop.f32.mrf.mxu1 }
 0x94f   : > { %v1875_v58 = vadd.f32 %v2683_v22, %v1565_v43  ;;  %v1946_v11 = vadd.f32 %v1931_v21, %v1910_v4  ;;  %v1904_v42 = vmul.f32 %v1885_v63, %v1864_v62  ;;  %v1815_v12 = vadd.f32 %v1814_v61, %v1555_v38 }
 0x950   : > { %v1816_v23 = vpop.f32.mrf.mxu0  ;;  %v1866_v55 = vpop.f32.mrf.mxu1  ;;  %v1903_v30 = vmul.f32 %v1885_v63, %v1813_v56  ;;  %v2913_v63 = vmov 2  }
 0x951   : > { %v1913_v8 = vmul.f32 %v1900_v20, %v1875_v58  ;;  %v1867_v25 = vadd.f32 %v1866_v55, %v1555_v38  ;;  %v1817_v36 = vadd.f32 %v1816_v23, %v1555_v38  ;;  %v1958_v45 = vmax.f32 %v1946_v11, 0.0  ;;  %2837 = vset.pattern.permute.xlu0 %v2913_v63  ;;  %v1976_v58 = vpop.permute.xlu1 %1975  ;;  %v1972_v55 = vpop.permute.xlu0 %1971 }
 0x952   : > { %v1820_v10 = vpop.f32.mrf.mxu0  ;;  %v1940_v46 = vadd.f32 %v1921_v6, %v1904_v42  ;;  %v1905_v51 = vmul.f32 %v1890_v59, %v1815_v12  ;;  %v1939_v38 = vadd.f32 %v1921_v6, %v1903_v30  ;;  %2118 = vperm.xlu0 %2837, %v2976_v0  }
 0x953   : > { %v1949_v26 = vadd.f32 %v1936_v53, %v1913_v8  ;;  %v1907_v3 = vmul.f32 %v1890_v59, %v1867_v25  ;;  %v1821_v60 = vadd.f32 %v1820_v10, %v1560_v15  ;;  %v1906_v35 = vmul.f32 %v1890_v59, %v1817_v36 }
 0x954   : > { %v1822_v27 = vpop.f32.mrf.mxu0  ;;  %v1952_v48 = vmax.f32 %v1940_v46, 0.0  ;;  %v1941_v39 = vadd.f32 %v1926_v13, %v1905_v51  ;;  %v1951_v4 = vmax.f32 %v1939_v38, 0.0 }
 0x955   : > { %v1823_v44 = vadd.f32 %v1822_v27, %v1560_v15  ;;  %v1961_v54 = vmax.f32 %v1949_v26, 0.0  ;;  %v1943_v28 = vadd.f32 %v1926_v13, %v1907_v3  ;;  %v1908_v16 = vmul.f32 %v1895_v14, %v1821_v60  ;;  %v2076_v23 = vpop.permute.xlu1 %2075  ;;  %v2081_v26 = vpop.permute.xlu0 %2080 }
 0x956   : > { %v1824_v34 = vpop.f32.mrf.mxu0  ;;  %v1942_v52 = vadd.f32 %v1926_v13, %v1906_v35 }
 0x957   : > { %v1909_v18 = vmul.f32 %v1895_v14, %v1823_v44  ;;  %v1825_v19 = vadd.f32 %v1824_v34, %v1565_v43  ;;  %v1969_v33 = vpack.c.bf16 %v1961_v54, %v1958_v45  ;;  %v1955_v49 = vmax.f32 %v1943_v28, 0.0  ;;  %v2842_v14 = vld [vmem:[%s3675_s2] sm:$0xff]  }
 0x958   : > { %v1826_v17 = vpop.f32.mrf.mxu0  ;;  %v1944_v15 = vadd.f32 %v1931_v21, %v1908_v16  ;;  %v1954_v9 = vmax.f32 %v1942_v52, 0.0 }
 0x959   : > { %v1911_v31 = vmul.f32 %v1900_v20, %v1825_v19  ;;  %v1827_v47 = vadd.f32 %v1826_v17, %v1565_v43  ;;  %2685 = vmatpush3.bf16.msra.mxu0 %v1969_v33  ;;  %v1945_v29 = vadd.f32 %v1931_v21, %v1909_v18  ;;  %v1966_v2 = vpack.c.bf16 %v1955_v49, %v1952_v48  ;;  %v2094_v42 = vpop.permute.xlu1 %2093 }
 0x95a   : > { %2686 = vmatprep.subr.bf16.mxu0 %v2910_v57  ;;  %v1956_v37 = vmax.f32 %v1944_v15, 0.0  ;;  %v1965_v61 = vpack.c.bf16 %v1954_v9, %v1951_v4  ;;  %v2914_v15 = vmov 3  }
 0x95b   : > { %v1947_v7 = vadd.f32 %v1936_v53, %v1911_v31  ;;  %v1912_v40 = vmul.f32 %v1900_v20, %v1827_v47  ;;  %v1957_v41 = vmax.f32 %v1945_v29, 0.0  ;;  %v1938_v20 = vadd.f32 %v1921_v6, %v1902_v24  ;;  %2838 = vset.pattern.permute.xlu1 %v2914_v15  ;;  %2839 = vset.pattern.permute.xlu0 %v2914_v15 }
 0x95c   : > { %2213 = vperm.xlu1 %2838, %v2976_v0  }
 0x95d   : > { %v1948_v1 = vadd.f32 %v1936_v53, %v1912_v40  ;;  %v1959_v43 = vmax.f32 %v1947_v7, 0.0  ;;  %2687 = vmatpush3.bf16.msra.mxu0 %v1966_v2  ;;  %v1953_v53 = vmax.f32 %v1941_v39, 0.0  ;;  %v1950_v22 = vmax.f32 %v1938_v20, 0.0  ;;  %v2099_v27 = vpop.permute.xlu1 %2098 }
 0x95e   : > { %2692 = vmatprep.subr.bf16.mxu0 %v2910_v57 }
 0x95f   : > { %v1960_v5 = vmax.f32 %v1948_v1, 0.0  ;;  %v1967_v21 = vpack.c.bf16 %v1959_v43, %v1956_v37  ;;  %v1964_v59 = vpack.c.bf16 %v1953_v53, %v1950_v22 }
 0x960   : > { %2689 = vmatmul.mubr.msk.bf16.vlgmr.msra.gmra.mxu0 %vm1983_vm10, %v2842_v14 }
 0x961   : > { %v1968_v62 = vpack.c.bf16 %v1960_v5, %v1957_v41  ;;  %2694 = vmatprep.mubr.msk.bf16.mxu0 %vm2911_vm9, %v2910_v57 }
 0x963   : > { %1999 = vmatprep.subr.bf16.mxu1 %v1968_v62 }
 0x964   : > { %2000 = vmatpush1.bf16.msra.mxu1 %v1967_v21 }
 0x965   : > { %2001 = vmatprep.subr.bf16.mxu1 %v1965_v61 }
 0x968   : > { %2002 = vmatpush1.bf16.msra.mxu1 %v1964_v59 }
 0x96b   : > { %2504 = vmatmul.mubr.msk.bf16.vlgmr.msra.gmra.mxu1 %vm1983_vm10, %v2842_v14 }
 0x96c   : > { %2156 = vmatprep.mubr.bf16.mxu1 %v2909_v50 }
 0xa20   : > { %v2064_v11 = vpop.f32.mrf.mxu0 }
 0xa21   : > { %v2065_v8 = vadd.f32 %v2064_v11, %v1972_v55 }
 0xa22   : > { %v2690_v25 = vpop.f32.mrf.mxu0 }
 0xa23   : > { %v2085_v10 = vmul.f32 %v2076_v23, %v2065_v8 }
 0xa24   : > { %v2067_v36 = vpop.f32.mrf.mxu0 }
 0xa25   : > { %v2103_v3 = vadd.f32 %v2094_v42, %v2085_v10  ;;  %v2068_v60 = vadd.f32 %v2067_v36, %v1976_v58 }
 0xa26   : > { %v2691_v13 = vpop.f32.mrf.mxu0 }
 0xa27   : > { %v2088_v6 = vmul.f32 %v2081_v26, %v2068_v60  ;;  %v2109_v56 = vmax.f32 %v2103_v3, 0.0 }
 0xa29   : > { %v2106_v12 = vadd.f32 %v2099_v27, %v2088_v6 }
 0xa2b   : > { %v2021_v44 = vpop.f32.mrf.mxu1  ;;  %v2112_v45 = vmax.f32 %v2106_v12, 0.0 }
 0xa2c   : > { %v2022_v46 = vadd.f32 %v2021_v44, %v1972_v55 }
 0xa2d   : > { %v2023_v54 = vpop.f32.mrf.mxu1  ;;  %v2116_v28 = vpack.c.bf16 %v2112_v45, %v2109_v56 }
 0xa2e   : > { %v2024_v34 = vadd.f32 %v2023_v54, %v1972_v55  ;;  %v2083_v33 = vmul.f32 %v2076_v23, %v2022_v46 }
 0xa2f   : > { %v2025_v35 = vpop.f32.mrf.mxu1  ;;  %2693 = vmatpush3.bf16.msra.mxu0 %v2116_v28 }
 0xa30   : > { %v2084_v18 = vmul.f32 %v2076_v23, %v2024_v34  ;;  %v2026_v19 = vadd.f32 %v2025_v35, %v1976_v58  ;;  %2698 = vmatprep.subr.bf16.mxu0 %v2910_v57  ;;  %v2101_v48 = vadd.f32 %v2094_v42, %v2083_v33 }
 0xa31   : > { %v2027_v49 = vpop.f32.mrf.mxu1 }
 0xa32   : > { %v2086_v16 = vmul.f32 %v2081_v26, %v2026_v19  ;;  %v2028_v17 = vadd.f32 %v2027_v49, %v1976_v58  ;;  %2695 = vmatmul.mubr.msk.bf16.vlgmr.msra.gmra.mxu0 %vm1697_vm8, %v2113_v32  ;;  %v2102_v30 = vadd.f32 %v2094_v42, %v2084_v18  ;;  %v2107_v40 = vmax.f32 %v2101_v48, 0.0  ;;  %v2214_v58 = vpop.permute.xlu1 %2213 }
 0xa33   : > { %2700 = vmatprep.mubr.msk.bf16.mxu0 %vm2911_vm9, %v2910_v57  ;;  %v2119_v57 = vpop.permute.xlu0 %2118 }
 0xa34   : > { %v2104_v31 = vadd.f32 %v2099_v27, %v2086_v16  ;;  %v2087_v47 = vmul.f32 %v2081_v26, %v2028_v17  ;;  %v2108_v29 = vmax.f32 %v2102_v30, 0.0 }
 0xa36   : > { %v2105_v51 = vadd.f32 %v2099_v27, %v2087_v47  ;;  %v2110_v52 = vmax.f32 %v2104_v31, 0.0 }
 0xa38   : > { %v2111_v7 = vmax.f32 %v2105_v51, 0.0  ;;  %v2114_v2 = vpack.c.bf16 %v2110_v52, %v2107_v40 }
 0xa3a   : > { %v2115_v24 = vpack.c.bf16 %v2111_v7, %v2108_v29 }
 0xa3c   : > { %2138 = vmatprep.subr.bf16.mxu1 %v2115_v24 }
 0xa3d   : > { %2139 = vmatpush1.bf16.msra.mxu1 %v2114_v2 }
 0xa40   : > { %2506 = vmatmul.mubr.msk.bf16.vlgmr.msra.gmra.mxu1 %vm1697_vm8, %v2113_v32 }
 0xa41   : > { %2262 = vmatprep.mubr.bf16.mxu1 %v2909_v50  ;;  %v2208_v50 = vld [vmem:[%s3677_s4] sm:$0xf] }
 0xaf2   : > { %v2199_v38 = vpop.f32.mrf.mxu0 }
 0xaf3   : > { %v2200_v1 = vadd.f32 %v2199_v38, %v2119_v57 }
 0xaf4   : > { %v2696_v14 = vpop.f32.mrf.mxu0 }
 0xaf5   : > { %v2207_v39 = vmax.f32 %v2200_v1, 0.0 }
 0xaf6   : > { %v2202_v43 = vpop.f32.mrf.mxu0 }
 0xaf7   : > { %v2211_v9 = vpack.c.bf16 %v2207_v39, %v2207_v39 }
 0xaf8   : > { %v2697_v41 = vpop.f32.mrf.mxu0 }
 0xaf9   : > { %v2228_v5 = vsel %vm2220_vm11, %v2211_v9, 0 }
 0xafa   : > { %2699 = vmatpush3.bf16.msra.mxu0 %v2228_v5 }
 0xafd   : > { %2701 = vmatmul.mubr.msk.bf16.vlgmr.msra.gmra.mxu0 %vm2216_vm12, %v2208_v50 }
 0xb00   : > { %v2158_v20 = vpop.f32.mrf.mxu1 }
 0xb01   : > { %v2159_v0 = vadd.f32 %v2158_v20, %v2119_v57 }
 0xb02   : > { %v2160_v37 = vpop.f32.mrf.mxu1 }
 0xb03   : > { %v2205_v4 = vmax.f32 %v2159_v0, 0.0  ;;  %v2161_v62 = vadd.f32 %v2160_v37, %v2119_v57 }
 0xb04   : > { %v2162_v53 = vpop.f32.mrf.mxu1 }
 0xb05   : > { %v2209_v21 = vpack.c.bf16 %v2205_v4, %v2205_v4  ;;  %v2206_v61 = vmax.f32 %v2161_v62, 0.0 }
 0xb06   : > { %v2163_v22 = vpop.f32.mrf.mxu1 }
 0xb07   : > { %v2210_v59 = vpack.c.bf16 %v2206_v61, %v2206_v61  ;;  %v2222_v63 = vsel %vm2220_vm11, %v2209_v21, 0 }
 0xb09   : > { %2508 = vmatprep.subr.msk.bf16.mxu1 %vm2220_vm11, %v2210_v59 }
 0xb0a   : > { %2245 = vmatpush1.bf16.msra.mxu1 %v2222_v63 }
 0xb0d   : > { %2509 = vmatmul.mubr.msk.bf16.vlgmr.msra.gmra.mxu1 %vm2216_vm12, %v2208_v50 }
 0xbbd   : > { %v2305_v23 = vpop.f32.mrf.mxu0 }
 0xbbe   : > { %v2306_v55 = vadd.f32 %v2305_v23, %v2214_v58 }
 0xbbf   : > { %v2702_v11 = vpop.f32.mrf.mxu0 }
 0xbc0   : > { %2313 = vst [vmem:[#allocation6 + $0x10] sm:$0xff] %v2306_v55 }
 0xbc1   : > { %v2308_v42 = vpop.f32.mrf.mxu0 }
 0xbc3   : > { %v2703_v8 = vpop.f32.mrf.mxu0 }
 0xbcd   : > { %v2264_v25 = vpop.f32.mrf.mxu1 }
 0xbce   : > { %v2265_v10 = vadd.f32 %v2264_v25, %v2214_v58 }
 0xbcf   : > { %v2266_v36 = vpop.f32.mrf.mxu1 }
 0xbd0   : > { %v2267_v26 = vadd.f32 %v2266_v36, %v2214_v58  ;;  %2311 = vst [vmem:[#allocation6] sm:$0xff] %v2265_v10 }
 0xbd1   : > { %v2268_v3 = vpop.f32.mrf.mxu1 }
 0xbd2   : > { %2312 = vst [vmem:[#allocation6 + $0x8] sm:$0xff] %v2267_v26 }
 0xbd3   : > { %v2269_v60 = vpop.f32.mrf.mxu1 }
 0xbd4 PF: > { %p3650_p8 = scmp.eq.s32.totalorder %s2401_s24, 2  ;;  %s2915_s9 = smov [#allocation6]  }
 0xbd5   : > { %s2331_s10 = sshll.u32 %s2915_s9, 4  ;;  %s2332_s10 = int_to_ptr.vmem [resolvable:$true] %s2331_s10 }
 0xbd6   : > { %s2843_s11 = scalar_lea.vmem %s2332_s10, 384  ;;  %s2849_s12 = scalar_lea.vmem %s2332_s10, 768 }
 0xbd7   : > { %p2844_p9 = scmp.ne.s32.totalorder %s2332_s10, %s2843_s11  ;;  %p2850_p12 = scmp.lt.s32.totalorder %s2332_s10, %s2332_s10 }
 0xbd8   : > { %p2851_p13 = scmp.lt.s32.totalorder %s2849_s12, %s2843_s11 }
 0xbd9   : > { %p2845_p10 = pnand %p2844_p9, %p3650_p8 }
 0xbda   : > { %p2852_p0 = por %p2851_p13, %p2850_p12 }
 0xbdb   : > { %p2846_p11 = pneg %p2845_p10 }
 0xbdd   : > { %p2853_p1 = pnand %p2852_p0, %p2846_p11 }
 0xbdf   : > { %2856 = shalt.err (!%p2853_p1)
}
 0xbe0   : > { %2753 = dma.vmem_to_hbm [thread:$0]  (%p3650_p8), %s2332_s10, 384, %s3679_s6, [#allocation7]  }
 0xbe1 PF: > { %p2761_p2 = scmp.ge.s32.totalorder %s2893_s23, 2  ;;  %p2762_p3 = scmp.eq.s32.totalorder %s2402_s25, 2 }
 0xbe3   : > { %p2757_p4 = pnand %p2762_p3, %p2761_p2 }
 0xbe5   : > { %p2758_p5 = pneg %p2757_p4 }
 0xbe7   : > { %2880 = dma.done.wait (%p2758_p5), [#allocation7], 384  }
 0xbe8   : > { %2882 = vsyncadd (%p2758_p5), [#allocation7], 4294966912  ;;  %s19_s23 = sadd.s32 1, %s2893_s23   ;;  %s3793_s21 = smov %s2889_s22 }
 0xbe9   : > { %p16_p6 = scmp.ge.s32.totalorder %s19_s23, 5   ;;  %s3794_s22 = smov %s3796_s26 }
 0xbeb   :  { %18 = sbr.rel (!%p16_p6) target bundleno = 3 (0x3), region = 103 }
 0xbf0   :  { %2349 = vsyncpa [#allocation7], 1 }
 0xbf1   :  { %2351 = vsyncpa [#allocation7 + $0x1], 1 }

</bundles_post_ra>
